<compile_context>
chip_gen: v6e
topology: v6e:2x2x1
jax: 0.10.0
libtpu: 0.0.40
codegen_flags: <defaults>
</compile_context>

<pallas_src>
import functools

import jax
import jax.numpy as jnp
from jax.experimental import pallas as pl
from jax.experimental.pallas import tpu as pltpu


def _lstm_attn_kernel(x_ref, g_ref, l_ref, o_ref,
                      xg_scr, hf_scr, hb_scr, sc_scr, *, T, B):
    """Fused bi-LSTM + attention pooling + output projection.

    Operands (all f32, all VMEM):
      x_ref  : (T*B, E)        input, seq-major flattened (row = t*B + b)
      g_ref  : (E+H+1, 8H)     [W_ih^T | W_hh^T | b_ih+b_hh], fwd lanes 0:4H,
                               bwd lanes 4H:8H, PyTorch gate order (i,f,g,o)
      l_ref  : (4H+3, d_a)     rows 0:H w1_fwd^T, H:2H w1_bwd^T,
                               2H:3H w3_fwd^T (zero-padded to d_a lanes),
                               3H:4H w3_bwd^T, then b1, w2, b3 rows
      o_ref  : (B, E)
    Scratch:
      xg_scr : (T*B, 8H)       precomputed x-gates (both directions)
      hf_scr : (T*B, H)        forward hidden states
      hb_scr : (T*B, H)        backward hidden states
      sc_scr : (T*B, 1)        attention scores
    """
    E = x_ref.shape[1]
    H = E                               # module ties hidden_dim == emb_dimension
    H4 = 4 * H
    d_a = l_ref.shape[1]

    # ---- weights, loaded once from the two packed slabs ----
    w_ih = g_ref[0:E, :]                        # (E, 8H)
    whh_f = g_ref[E:E + H, 0:H4]                # (H, 4H)
    whh_b = g_ref[E:E + H, H4:2 * H4]           # (H, 4H)
    bias = g_ref[E + H:E + H + 1, :]            # (1, 8H)  b_ih + b_hh, both dirs

    w1f = l_ref[0:H, :]                         # (H, d_a)
    w1b = l_ref[H:2 * H, :]                     # (H, d_a)
    w3f = l_ref[2 * H:3 * H, :]                 # (H, d_a), zero past lane E
    w3b = l_ref[3 * H:4 * H, :]                 # (H, d_a), zero past lane E
    b1 = l_ref[4 * H:4 * H + 1, :]              # (1, d_a)
    w2 = l_ref[4 * H + 1:4 * H + 2, :]          # (1, d_a)
    b3 = l_ref[4 * H + 2:4 * H + 3, :]          # (1, d_a), zero past lane E

    # ---- hoist ALL input projections (and biases) out of the recurrence:
    #      one 256-lane MXU dot covers x@W_ih for both directions & all gates.
    xg_scr[...] = (jnp.dot(x_ref[...], w_ih, preferred_element_type=jnp.float32)
                   + bias)

    # Per-step, per-direction (B, 4H) gate inputs (lane split at 4H=128 is a
    # whole-vreg selection).
    xg_f, xg_b = [], []
    for t in range(T):
        chunk = xg_scr[pl.ds(t * B, B), :]      # (B, 8H)
        xg_f.append(chunk[:, 0:H4])
        xg_b.append(chunk[:, H4:2 * H4])

    def cell(xg_t, h, c, whh):
        # One fused (B, H) @ (H, 4H=128) dot per direction per step; one
        # sigmoid + one tanh over the full 128-lane gate vector (PyTorch gate
        # order i, f, g, o — slicing picks the right quarters).
        pre = xg_t + jnp.dot(h, whh, preferred_element_type=jnp.float32)
        sig = jax.nn.sigmoid(pre)
        tnh = jnp.tanh(pre)
        i_g = sig[:, 0:H]
        f_g = sig[:, H:2 * H]
        g_g = tnh[:, 2 * H:3 * H]
        o_g = sig[:, 3 * H:4 * H]
        c_new = f_g * c + i_g * g_g
        h_new = o_g * jnp.tanh(c_new)
        return h_new, c_new

    zeros = jnp.zeros((B, H), jnp.float32)
    hf, cf = zeros, zeros
    hb, cb = zeros, zeros
    hs_f = [None] * T
    hs_b = [None] * T
    # Interleave the two independent direction chains (fwd step t and bwd step
    # T-1-t emitted together) so the scheduler can overlap MXU/EUP latency.
    for t in range(T):
        tb = T - 1 - t
        hf, cf = cell(xg_f[t], hf, cf, whh_f)
        hb, cb = cell(xg_b[tb], hb, cb, whh_b)
        hs_f[t] = hf
        hs_b[tb] = hb
        hf_scr[pl.ds(t * B, B), :] = hf
        hb_scr[pl.ds(tb * B, B), :] = hb

    # ---- attention, batched over all T time steps at once ----
    hf_all = hf_scr[...]                        # (T*B, H)
    hb_all = hb_scr[...]                        # (T*B, H)
    a = jnp.tanh(jnp.dot(hf_all, w1f, preferred_element_type=jnp.float32)
                 + jnp.dot(hb_all, w1b, preferred_element_type=jnp.float32)
                 + b1)                          # (T*B, d_a)
    # linear_second; its scalar bias shifts every score equally and cancels
    # in the dim-0 softmax, so it is omitted.
    sc_scr[...] = jnp.sum(a * w2, axis=-1, keepdims=True)   # (T*B, 1)

    # Numerically stable softmax over time (dim 0), per batch column.
    s = [sc_scr[pl.ds(t * B, B), :] for t in range(T)]      # T x (B, 1)
    m = s[0]
    for t in range(1, T):
        m = jnp.maximum(m, s[t])
    e = [jnp.exp(s[t] - m) for t in range(T)]
    denom = e[0]
    for t in range(1, T):
        denom = denom + e[t]
    inv = 1.0 / denom                                       # (B, 1)
    wts = [e[t] * inv for t in range(T)]                    # T x (B, 1)

    # Softmax-weighted sum over time, kept split per direction (the fwd|bwd
    # concat is folded into the split w1/w3 weights, never materialized).
    yf = wts[0] * hs_f[0]
    yb = wts[0] * hs_b[0]
    for t in range(1, T):
        yf = yf + wts[t] * hs_f[t]
        yb = yb + wts[t] * hs_b[t]

    # ---- final projection: linear_third(concat(yf, yb)) ----
    out = (jnp.dot(yf, w3f, preferred_element_type=jnp.float32)
           + jnp.dot(yb, w3b, preferred_element_type=jnp.float32)
           + b3)                                # (B, d_a); lanes >= E are 0
    o_ref[...] = out[:, 0:E]


def _vmem_spec():
    return pl.BlockSpec(memory_space=pltpu.MemorySpace.VMEM)


def pack_params(p):
    """One-time (model-load) repack of PyTorch-layout weights into two
    lane-dense slabs.  Keep this OUT of the per-call jit path."""
    E = p["w_ih_f"].shape[1]
    H = p["w_hh_f"].shape[1]
    d_a = p["w1"].shape[0]
    H4 = 4 * H
    f32 = jnp.float32

    # Slab 1: fused-gate weights & biases, both directions, PyTorch gate
    # order (i, f, g, o), transposed so the kernel does (rows, K) @ (K, 4H).
    g = jnp.zeros((E + H + 1, 2 * H4), f32)
    g = g.at[0:E, 0:H4].set(p["w_ih_f"].T.astype(f32))
    g = g.at[0:E, H4:].set(p["w_ih_b"].T.astype(f32))
    g = g.at[E:E + H, 0:H4].set(p["w_hh_f"].T.astype(f32))
    g = g.at[E:E + H, H4:].set(p["w_hh_b"].T.astype(f32))
    g = g.at[E + H, 0:H4].set((p["b_ih_f"] + p["b_hh_f"]).astype(f32))
    g = g.at[E + H, H4:].set((p["b_ih_b"] + p["b_hh_b"]).astype(f32))

    # Slab 2: attention + output projection.  w1/w3 are split into fwd/bwd
    # halves (folds the bidirectional concat); w3/b3 zero-padded to d_a lanes.
    l = jnp.zeros((4 * H + 3, d_a), f32)
    l = l.at[0:H, :].set(p["w1"][:, :H].T.astype(f32))
    l = l.at[H:2 * H, :].set(p["w1"][:, H:].T.astype(f32))
    l = l.at[2 * H:3 * H, 0:E].set(p["w3"][:, :H].T.astype(f32))
    l = l.at[3 * H:4 * H, 0:E].set(p["w3"][:, H:].T.astype(f32))
    l = l.at[4 * H, :].set(p["b1"].astype(f32))
    l = l.at[4 * H + 1, :].set(p["w2"][0].astype(f32))
    l = l.at[4 * H + 2, 0:E].set(p["b3"].astype(f32))
    # p["b2"] (linear_second bias) is deliberately not packed: the dim-0
    # softmax is invariant to a constant shift of every score.
    return g, l


def lstm_model_forward(x, gate_slab, lin_slab):
    """x: (T, B, E) f32, seq-major (batch_first=False). Returns (B, E)."""
    T, B, E = x.shape
    H = E
    kernel = functools.partial(_lstm_attn_kernel, T=T, B=B)
    return pl.pallas_call(
        kernel,
        out_shape=jax.ShapeDtypeStruct((B, E), jnp.float32),
        in_specs=[_vmem_spec()] * 3,
        out_specs=_vmem_spec(),
        scratch_shapes=[
            pltpu.VMEM((T * B, 8 * H), jnp.float32),   # precomputed x-gates
            pltpu.VMEM((T * B, H), jnp.float32),       # fwd hidden states
            pltpu.VMEM((T * B, H), jnp.float32),       # bwd hidden states
            pltpu.VMEM((T * B, 1), jnp.float32),       # attention scores
        ],
    )(x.reshape(T * B, E), gate_slab, lin_slab)


def reference_forward(x, p):
    """Pure-JAX reference matching the PyTorch module semantics."""
    T, B, E = x.shape
    H = E

    def run_dir(w_ih, w_hh, b_ih, b_hh, reverse):
        h = jnp.zeros((B, H), jnp.float32)
        c = jnp.zeros((B, H), jnp.float32)
        order = range(T - 1, -1, -1) if reverse else range(T)
        outs = [None] * T
        for t in order:
            g = x[t] @ w_ih.T + h @ w_hh.T + b_ih + b_hh
            i = jax.nn.sigmoid(g[:, 0:H])
            f = jax.nn.sigmoid(g[:, H:2 * H])
            gg = jnp.tanh(g[:, 2 * H:3 * H])
            o = jax.nn.sigmoid(g[:, 3 * H:4 * H])
            c = f * c + i * gg
            h = o * jnp.tanh(c)
            outs[t] = h
        return jnp.stack(outs)                      # (T, B, H)

    lstm_out = jnp.concatenate(
        [run_dir(p["w_ih_f"], p["w_hh_f"], p["b_ih_f"], p["b_hh_f"], False),
         run_dir(p["w_ih_b"], p["w_hh_b"], p["b_ih_b"], p["b_hh_b"], True)],
        axis=-1)                                    # (T, B, 2H)
    a = jnp.tanh(lstm_out @ p["w1"].T + p["b1"])
    a = a @ p["w2"].T + p["b2"]                     # (T, B, 1)
    a = jax.nn.softmax(a, axis=0)
    y = jnp.sum(a * lstm_out, axis=0)               # (B, 2H)
    return y @ p["w3"].T + p["b3"]


if __name__ == "__main__":
    # emb_dimension = hidden_dim = 32, d_a = 128 (module default).
    # seq_len MUST be 5: forward() hard-codes a.expand(5, batch, 2*hidden).
    T, B, E, D_A = 5, 2, 32, 128
    H = E

    key = jax.random.PRNGKey(0)
    ks = jax.random.split(key, 12)

    initrange = 1.0 / E          # module's init for forward-dir LSTM weights
    stdv_h = 1.0 / (H ** 0.5)    # PyTorch default LSTM init for the rest
    stdv_2h = 1.0 / ((2 * H) ** 0.5)
    stdv_da = 1.0 / (D_A ** 0.5)

    x = jax.random.normal(ks[0], (T, B, E), jnp.float32)

    params = {
        # forward direction (weight_ih_l0 / weight_hh_l0: uniform(-1/emb, 1/emb))
        "w_ih_f": jax.random.uniform(ks[1], (4 * H, E), jnp.float32, -initrange, initrange),
        "w_hh_f": jax.random.uniform(ks[2], (4 * H, H), jnp.float32, -initrange, initrange),
        "b_ih_f": jax.random.uniform(ks[3], (4 * H,), jnp.float32, -stdv_h, stdv_h),
        "b_hh_f": jax.random.uniform(ks[4], (4 * H,), jnp.float32, -stdv_h, stdv_h),
        # reverse direction (PyTorch default init)
        "w_ih_b": jax.random.uniform(ks[5], (4 * H, E), jnp.float32, -stdv_h, stdv_h),
        "w_hh_b": jax.random.uniform(ks[6], (4 * H, H), jnp.float32, -stdv_h, stdv_h),
        "b_ih_b": jax.random.uniform(ks[7], (4 * H,), jnp.float32, -stdv_h, stdv_h),
        "b_hh_b": jax.random.uniform(ks[8], (4 * H,), jnp.float32, -stdv_h, stdv_h),
        # linear_first (2H -> d_a), bias filled with 0 in the module
        "w1": jax.random.uniform(ks[9], (D_A, 2 * H), jnp.float32, -stdv_2h, stdv_2h),
        "b1": jnp.zeros((D_A,), jnp.float32),
        # linear_second (d_a -> 1), bias 0
        "w2": jax.random.uniform(ks[10], (1, D_A), jnp.float32, -stdv_da, stdv_da),
        "b2": jnp.zeros((1,), jnp.float32),
        # linear_third (2H -> emb), bias 0
        "w3": jax.random.uniform(ks[11], (E, 2 * H), jnp.float32, -stdv_2h, stdv_2h),
        "b3": jnp.zeros((E,), jnp.float32),
    }

    # One-time weight repack (model-load time), outside the per-call jit path.
    gate_slab, lin_slab = pack_params(params)
    gate_slab, lin_slab = jax.block_until_ready((gate_slab, lin_slab))

    fwd = jax.jit(lstm_model_forward)
    out = fwd(x, gate_slab, lin_slab)
    jax.block_until_ready(out)

    assert out.shape == (B, E) and out.dtype == jnp.float32
    assert bool(jnp.all(jnp.isfinite(out)))

    ref = reference_forward(x, params)
    max_err = float(jnp.max(jnp.abs(out - ref)))
    assert max_err < 1e-4, f"mismatch vs reference: max_err={max_err}"

    print("KERNEL_OK")
</pallas_src>

<mosaic_0001>
module attributes {stable_mosaic.version = 11 : i64} {
  func.func @_lstm_attn_kernel(%arg0: memref<10x32xf32, #tpu.memory_space<vmem>>, %arg1: memref<65x256xf32, #tpu.memory_space<vmem>>, %arg2: memref<131x128xf32, #tpu.memory_space<vmem>>, %arg3: memref<2x32xf32, #tpu.memory_space<vmem>>, %arg4: memref<10x256xf32, #tpu.memory_space<vmem>>, %arg5: memref<10x32xf32, #tpu.memory_space<vmem>>, %arg6: memref<10x32xf32, #tpu.memory_space<vmem>>, %arg7: memref<10x1xf32, #tpu.memory_space<vmem>>) attributes {dimension_semantics = [], scalar_prefetch = 0 : i64, scratch_operands = 4 : i64, tpu.core_type = #tpu.core_type<tc>} {
    %c0 = arith.constant 0 : index
    %c0_0 = arith.constant 0 : index
    %0 = vector.load %arg1[%c0, %c0_0] : memref<65x256xf32, #tpu.memory_space<vmem>>, vector<32x256xf32>
    %c32 = arith.constant 32 : index
    %c0_1 = arith.constant 0 : index
    %1 = vector.load %arg1[%c32, %c0_1] : memref<65x256xf32, #tpu.memory_space<vmem>>, vector<32x128xf32>
    %c32_2 = arith.constant 32 : index
    %c128 = arith.constant 128 : index
    %2 = vector.load %arg1[%c32_2, %c128] : memref<65x256xf32, #tpu.memory_space<vmem>>, vector<32x128xf32>
    %c64 = arith.constant 64 : index
    %c0_3 = arith.constant 0 : index
    %3 = vector.load %arg1[%c64, %c0_3] : memref<65x256xf32, #tpu.memory_space<vmem>>, vector<1x256xf32>
    %c0_4 = arith.constant 0 : index
    %c0_5 = arith.constant 0 : index
    %4 = vector.load %arg2[%c0_4, %c0_5] : memref<131x128xf32, #tpu.memory_space<vmem>>, vector<32x128xf32>
    %c32_6 = arith.constant 32 : index
    %c0_7 = arith.constant 0 : index
    %5 = vector.load %arg2[%c32_6, %c0_7] : memref<131x128xf32, #tpu.memory_space<vmem>>, vector<32x128xf32>
    %c64_8 = arith.constant 64 : index
    %c0_9 = arith.constant 0 : index
    %6 = vector.load %arg2[%c64_8, %c0_9] : memref<131x128xf32, #tpu.memory_space<vmem>>, vector<32x128xf32>
    %c96 = arith.constant 96 : index
    %c0_10 = arith.constant 0 : index
    %7 = vector.load %arg2[%c96, %c0_10] : memref<131x128xf32, #tpu.memory_space<vmem>>, vector<32x128xf32>
    %c128_11 = arith.constant 128 : index
    %c0_12 = arith.constant 0 : index
    %8 = vector.load %arg2[%c128_11, %c0_12] : memref<131x128xf32, #tpu.memory_space<vmem>>, vector<1x128xf32>
    %c129 = arith.constant 129 : index
    %c0_13 = arith.constant 0 : index
    %9 = vector.load %arg2[%c129, %c0_13] : memref<131x128xf32, #tpu.memory_space<vmem>>, vector<1x128xf32>
    %c130 = arith.constant 130 : index
    %c0_14 = arith.constant 0 : index
    %10 = vector.load %arg2[%c130, %c0_14] : memref<131x128xf32, #tpu.memory_space<vmem>>, vector<1x128xf32>
    %c0_15 = arith.constant 0 : index
    %c0_16 = arith.constant 0 : index
    %11 = vector.load %arg0[%c0_15, %c0_16] : memref<10x32xf32, #tpu.memory_space<vmem>>, vector<10x32xf32>
    %cst = arith.constant dense<0.000000e+00> : vector<10x256xf32>
    %12 = tpu.matmul %11, %0, %cst {dimension_numbers = #tpu.dot_dimension_numbers<[1], [0], [0], [1], [0, 0, 1, 1], [], []>} : vector<10x32xf32>, vector<32x256xf32>, vector<10x256xf32> -> vector<10x256xf32>
    %13 = vector.broadcast %3 : vector<1x256xf32> to vector<10x256xf32>
    %14 = arith.addf %12, %13 : vector<10x256xf32>
    %c0_17 = arith.constant 0 : index
    %c0_18 = arith.constant 0 : index
    %15 = vector.load %arg4[%c0_17, %c0_18] : memref<10x256xf32, #tpu.memory_space<vmem>>, vector<10x256xf32>
    tpu.vector_store %arg4[%c0_17, %c0_18], %14 {strides = array<i32>} : memref<10x256xf32, #tpu.memory_space<vmem>>, vector<10x256xf32>,
    %c0_19 = arith.constant 0 : index
    %c0_20 = arith.constant 0 : index
    %16 = vector.load %arg4[%c0_19, %c0_20] : memref<10x256xf32, #tpu.memory_space<vmem>>, vector<2x256xf32>
    %17 = vector.extract_strided_slice %16 {offsets = [0, 0], sizes = [2, 128], strides = [1, 1]} : vector<2x256xf32> to vector<2x128xf32>
    %18 = vector.extract_strided_slice %16 {offsets = [0, 128], sizes = [2, 128], strides = [1, 1]} : vector<2x256xf32> to vector<2x128xf32>
    %c2 = arith.constant 2 : index
    %c0_21 = arith.constant 0 : index
    %19 = vector.load %arg4[%c2, %c0_21] : memref<10x256xf32, #tpu.memory_space<vmem>>, vector<2x256xf32>
    %20 = vector.extract_strided_slice %19 {offsets = [0, 0], sizes = [2, 128], strides = [1, 1]} : vector<2x256xf32> to vector<2x128xf32>
    %21 = vector.extract_strided_slice %19 {offsets = [0, 128], sizes = [2, 128], strides = [1, 1]} : vector<2x256xf32> to vector<2x128xf32>
    %c4 = arith.constant 4 : index
    %c0_22 = arith.constant 0 : index
    %22 = vector.load %arg4[%c4, %c0_22] : memref<10x256xf32, #tpu.memory_space<vmem>>, vector<2x256xf32>
    %23 = vector.extract_strided_slice %22 {offsets = [0, 0], sizes = [2, 128], strides = [1, 1]} : vector<2x256xf32> to vector<2x128xf32>
    %24 = vector.extract_strided_slice %22 {offsets = [0, 128], sizes = [2, 128], strides = [1, 1]} : vector<2x256xf32> to vector<2x128xf32>
    %c6 = arith.constant 6 : index
    %c0_23 = arith.constant 0 : index
    %25 = vector.load %arg4[%c6, %c0_23] : memref<10x256xf32, #tpu.memory_space<vmem>>, vector<2x256xf32>
    %26 = vector.extract_strided_slice %25 {offsets = [0, 0], sizes = [2, 128], strides = [1, 1]} : vector<2x256xf32> to vector<2x128xf32>
    %27 = vector.extract_strided_slice %25 {offsets = [0, 128], sizes = [2, 128], strides = [1, 1]} : vector<2x256xf32> to vector<2x128xf32>
    %c8 = arith.constant 8 : index
    %c0_24 = arith.constant 0 : index
    %28 = vector.load %arg4[%c8, %c0_24] : memref<10x256xf32, #tpu.memory_space<vmem>>, vector<2x256xf32>
    %29 = vector.extract_strided_slice %28 {offsets = [0, 0], sizes = [2, 128], strides = [1, 1]} : vector<2x256xf32> to vector<2x128xf32>
    %30 = vector.extract_strided_slice %28 {offsets = [0, 128], sizes = [2, 128], strides = [1, 1]} : vector<2x256xf32> to vector<2x128xf32>
    %cst_25 = arith.constant 0.000000e+00 : f32
    %31 = vector.broadcast %cst_25 : f32 to vector<2x32xf32>
    %cst_26 = arith.constant dense<0.000000e+00> : vector<2x128xf32>
    %32 = tpu.matmul %31, %1, %cst_26 {dimension_numbers = #tpu.dot_dimension_numbers<[1], [0], [0], [1], [0, 0, 1, 1], [], []>} : vector<2x32xf32>, vector<32x128xf32>, vector<2x128xf32> -> vector<2x128xf32>
    %33 = arith.addf %17, %32 : vector<2x128xf32>
    %34 = arith.negf %33 : vector<2x128xf32>
    %35 = math.exp %34 : vector<2x128xf32>
    %cst_27 = arith.constant 1.000000e+00 : f32
    %36 = vector.broadcast %cst_27 : f32 to vector<2x128xf32>
    %37 = arith.addf %36, %35 : vector<2x128xf32>
    %38 = arith.divf %36, %37 : vector<2x128xf32>
    %39 = math.tanh %33 : vector<2x128xf32>
    %40 = vector.extract_strided_slice %38 {offsets = [0, 0], sizes = [2, 32], strides = [1, 1]} : vector<2x128xf32> to vector<2x32xf32>
    %41 = vector.extract_strided_slice %38 {offsets = [0, 32], sizes = [2, 32], strides = [1, 1]} : vector<2x128xf32> to vector<2x32xf32>
    %42 = vector.extract_strided_slice %39 {offsets = [0, 64], sizes = [2, 32], strides = [1, 1]} : vector<2x128xf32> to vector<2x32xf32>
    %43 = vector.extract_strided_slice %38 {offsets = [0, 96], sizes = [2, 32], strides = [1, 1]} : vector<2x128xf32> to vector<2x32xf32>
    %44 = arith.mulf %41, %31 : vector<2x32xf32>
    %45 = arith.mulf %40, %42 : vector<2x32xf32>
    %46 = arith.addf %44, %45 : vector<2x32xf32>
    %47 = math.tanh %46 : vector<2x32xf32>
    %48 = arith.mulf %43, %47 : vector<2x32xf32>
    %cst_28 = arith.constant dense<0.000000e+00> : vector<2x128xf32>
    %49 = tpu.matmul %31, %2, %cst_28 {dimension_numbers = #tpu.dot_dimension_numbers<[1], [0], [0], [1], [0, 0, 1, 1], [], []>} : vector<2x32xf32>, vector<32x128xf32>, vector<2x128xf32> -> vector<2x128xf32>
    %50 = arith.addf %30, %49 : vector<2x128xf32>
    %51 = arith.negf %50 : vector<2x128xf32>
    %52 = math.exp %51 : vector<2x128xf32>
    %cst_29 = arith.constant 1.000000e+00 : f32
    %53 = vector.broadcast %cst_29 : f32 to vector<2x128xf32>
    %54 = arith.addf %53, %52 : vector<2x128xf32>
    %55 = arith.divf %53, %54 : vector<2x128xf32>
    %56 = math.tanh %50 : vector<2x128xf32>
    %57 = vector.extract_strided_slice %55 {offsets = [0, 0], sizes = [2, 32], strides = [1, 1]} : vector<2x128xf32> to vector<2x32xf32>
    %58 = vector.extract_strided_slice %55 {offsets = [0, 32], sizes = [2, 32], strides = [1, 1]} : vector<2x128xf32> to vector<2x32xf32>
    %59 = vector.extract_strided_slice %56 {offsets = [0, 64], sizes = [2, 32], strides = [1, 1]} : vector<2x128xf32> to vector<2x32xf32>
    %60 = vector.extract_strided_slice %55 {offsets = [0, 96], sizes = [2, 32], strides = [1, 1]} : vector<2x128xf32> to vector<2x32xf32>
    %61 = arith.mulf %58, %31 : vector<2x32xf32>
    %62 = arith.mulf %57, %59 : vector<2x32xf32>
    %63 = arith.addf %61, %62 : vector<2x32xf32>
    %64 = math.tanh %63 : vector<2x32xf32>
    %65 = arith.mulf %60, %64 : vector<2x32xf32>
    %c0_30 = arith.constant 0 : index
    %c0_31 = arith.constant 0 : index
    %66 = vector.load %arg5[%c0_30, %c0_31] : memref<10x32xf32, #tpu.memory_space<vmem>>, vector<2x32xf32>
    tpu.vector_store %arg5[%c0_30, %c0_31], %48 {strides = array<i32>} : memref<10x32xf32, #tpu.memory_space<vmem>>, vector<2x32xf32>,
    %c8_32 = arith.constant 8 : index
    %c0_33 = arith.constant 0 : index
    %67 = vector.load %arg6[%c8_32, %c0_33] : memref<10x32xf32, #tpu.memory_space<vmem>>, vector<2x32xf32>
    tpu.vector_store %arg6[%c8_32, %c0_33], %65 {strides = array<i32>} : memref<10x32xf32, #tpu.memory_space<vmem>>, vector<2x32xf32>,
    %cst_34 = arith.constant dense<0.000000e+00> : vector<2x128xf32>
    %68 = tpu.matmul %48, %1, %cst_34 {dimension_numbers = #tpu.dot_dimension_numbers<[1], [0], [0], [1], [0, 0, 1, 1], [], []>} : vector<2x32xf32>, vector<32x128xf32>, vector<2x128xf32> -> vector<2x128xf32>
    %69 = arith.addf %20, %68 : vector<2x128xf32>
    %70 = arith.negf %69 : vector<2x128xf32>
    %71 = math.exp %70 : vector<2x128xf32>
    %cst_35 = arith.constant 1.000000e+00 : f32
    %72 = vector.broadcast %cst_35 : f32 to vector<2x128xf32>
    %73 = arith.addf %72, %71 : vector<2x128xf32>
    %74 = arith.divf %72, %73 : vector<2x128xf32>
    %75 = math.tanh %69 : vector<2x128xf32>
    %76 = vector.extract_strided_slice %74 {offsets = [0, 0], sizes = [2, 32], strides = [1, 1]} : vector<2x128xf32> to vector<2x32xf32>
    %77 = vector.extract_strided_slice %74 {offsets = [0, 32], sizes = [2, 32], strides = [1, 1]} : vector<2x128xf32> to vector<2x32xf32>
    %78 = vector.extract_strided_slice %75 {offsets = [0, 64], sizes = [2, 32], strides = [1, 1]} : vector<2x128xf32> to vector<2x32xf32>
    %79 = vector.extract_strided_slice %74 {offsets = [0, 96], sizes = [2, 32], strides = [1, 1]} : vector<2x128xf32> to vector<2x32xf32>
    %80 = arith.mulf %77, %46 : vector<2x32xf32>
    %81 = arith.mulf %76, %78 : vector<2x32xf32>
    %82 = arith.addf %80, %81 : vector<2x32xf32>
    %83 = math.tanh %82 : vector<2x32xf32>
    %84 = arith.mulf %79, %83 : vector<2x32xf32>
    %cst_36 = arith.constant dense<0.000000e+00> : vector<2x128xf32>
    %85 = tpu.matmul %65, %2, %cst_36 {dimension_numbers = #tpu.dot_dimension_numbers<[1], [0], [0], [1], [0, 0, 1, 1], [], []>} : vector<2x32xf32>, vector<32x128xf32>, vector<2x128xf32> -> vector<2x128xf32>
    %86 = arith.addf %27, %85 : vector<2x128xf32>
    %87 = arith.negf %86 : vector<2x128xf32>
    %88 = math.exp %87 : vector<2x128xf32>
    %cst_37 = arith.constant 1.000000e+00 : f32
    %89 = vector.broadcast %cst_37 : f32 to vector<2x128xf32>
    %90 = arith.addf %89, %88 : vector<2x128xf32>
    %91 = arith.divf %89, %90 : vector<2x128xf32>
    %92 = math.tanh %86 : vector<2x128xf32>
    %93 = vector.extract_strided_slice %91 {offsets = [0, 0], sizes = [2, 32], strides = [1, 1]} : vector<2x128xf32> to vector<2x32xf32>
    %94 = vector.extract_strided_slice %91 {offsets = [0, 32], sizes = [2, 32], strides = [1, 1]} : vector<2x128xf32> to vector<2x32xf32>
    %95 = vector.extract_strided_slice %92 {offsets = [0, 64], sizes = [2, 32], strides = [1, 1]} : vector<2x128xf32> to vector<2x32xf32>
    %96 = vector.extract_strided_slice %91 {offsets = [0, 96], sizes = [2, 32], strides = [1, 1]} : vector<2x128xf32> to vector<2x32xf32>
    %97 = arith.mulf %94, %63 : vector<2x32xf32>
    %98 = arith.mulf %93, %95 : vector<2x32xf32>
    %99 = arith.addf %97, %98 : vector<2x32xf32>
    %100 = math.tanh %99 : vector<2x32xf32>
    %101 = arith.mulf %96, %100 : vector<2x32xf32>
    %c2_38 = arith.constant 2 : index
    %c0_39 = arith.constant 0 : index
    %102 = vector.load %arg5[%c2_38, %c0_39] : memref<10x32xf32, #tpu.memory_space<vmem>>, vector<2x32xf32>
    tpu.vector_store %arg5[%c2_38, %c0_39], %84 {strides = array<i32>} : memref<10x32xf32, #tpu.memory_space<vmem>>, vector<2x32xf32>,
    %c6_40 = arith.constant 6 : index
    %c0_41 = arith.constant 0 : index
    %103 = vector.load %arg6[%c6_40, %c0_41] : memref<10x32xf32, #tpu.memory_space<vmem>>, vector<2x32xf32>
    tpu.vector_store %arg6[%c6_40, %c0_41], %101 {strides = array<i32>} : memref<10x32xf32, #tpu.memory_space<vmem>>, vector<2x32xf32>,
    %cst_42 = arith.constant dense<0.000000e+00> : vector<2x128xf32>
    %104 = tpu.matmul %84, %1, %cst_42 {dimension_numbers = #tpu.dot_dimension_numbers<[1], [0], [0], [1], [0, 0, 1, 1], [], []>} : vector<2x32xf32>, vector<32x128xf32>, vector<2x128xf32> -> vector<2x128xf32>
    %105 = arith.addf %23, %104 : vector<2x128xf32>
    %106 = arith.negf %105 : vector<2x128xf32>
    %107 = math.exp %106 : vector<2x128xf32>
    %cst_43 = arith.constant 1.000000e+00 : f32
    %108 = vector.broadcast %cst_43 : f32 to vector<2x128xf32>
    %109 = arith.addf %108, %107 : vector<2x128xf32>
    %110 = arith.divf %108, %109 : vector<2x128xf32>
    %111 = math.tanh %105 : vector<2x128xf32>
    %112 = vector.extract_strided_slice %110 {offsets = [0, 0], sizes = [2, 32], strides = [1, 1]} : vector<2x128xf32> to vector<2x32xf32>
    %113 = vector.extract_strided_slice %110 {offsets = [0, 32], sizes = [2, 32], strides = [1, 1]} : vector<2x128xf32> to vector<2x32xf32>
    %114 = vector.extract_strided_slice %111 {offsets = [0, 64], sizes = [2, 32], strides = [1, 1]} : vector<2x128xf32> to vector<2x32xf32>
    %115 = vector.extract_strided_slice %110 {offsets = [0, 96], sizes = [2, 32], strides = [1, 1]} : vector<2x128xf32> to vector<2x32xf32>
    %116 = arith.mulf %113, %82 : vector<2x32xf32>
    %117 = arith.mulf %112, %114 : vector<2x32xf32>
    %118 = arith.addf %116, %117 : vector<2x32xf32>
    %119 = math.tanh %118 : vector<2x32xf32>
    %120 = arith.mulf %115, %119 : vector<2x32xf32>
    %cst_44 = arith.constant dense<0.000000e+00> : vector<2x128xf32>
    %121 = tpu.matmul %101, %2, %cst_44 {dimension_numbers = #tpu.dot_dimension_numbers<[1], [0], [0], [1], [0, 0, 1, 1], [], []>} : vector<2x32xf32>, vector<32x128xf32>, vector<2x128xf32> -> vector<2x128xf32>
    %122 = arith.addf %24, %121 : vector<2x128xf32>
    %123 = arith.negf %122 : vector<2x128xf32>
    %124 = math.exp %123 : vector<2x128xf32>
    %cst_45 = arith.constant 1.000000e+00 : f32
    %125 = vector.broadcast %cst_45 : f32 to vector<2x128xf32>
    %126 = arith.addf %125, %124 : vector<2x128xf32>
    %127 = arith.divf %125, %126 : vector<2x128xf32>
    %128 = math.tanh %122 : vector<2x128xf32>
    %129 = vector.extract_strided_slice %127 {offsets = [0, 0], sizes = [2, 32], strides = [1, 1]} : vector<2x128xf32> to vector<2x32xf32>
    %130 = vector.extract_strided_slice %127 {offsets = [0, 32], sizes = [2, 32], strides = [1, 1]} : vector<2x128xf32> to vector<2x32xf32>
    %131 = vector.extract_strided_slice %128 {offsets = [0, 64], sizes = [2, 32], strides = [1, 1]} : vector<2x128xf32> to vector<2x32xf32>
    %132 = vector.extract_strided_slice %127 {offsets = [0, 96], sizes = [2, 32], strides = [1, 1]} : vector<2x128xf32> to vector<2x32xf32>
    %133 = arith.mulf %130, %99 : vector<2x32xf32>
    %134 = arith.mulf %129, %131 : vector<2x32xf32>
    %135 = arith.addf %133, %134 : vector<2x32xf32>
    %136 = math.tanh %135 : vector<2x32xf32>
    %137 = arith.mulf %132, %136 : vector<2x32xf32>
    %c4_46 = arith.constant 4 : index
    %c0_47 = arith.constant 0 : index
    %138 = vector.load %arg5[%c4_46, %c0_47] : memref<10x32xf32, #tpu.memory_space<vmem>>, vector<2x32xf32>
    tpu.vector_store %arg5[%c4_46, %c0_47], %120 {strides = array<i32>} : memref<10x32xf32, #tpu.memory_space<vmem>>, vector<2x32xf32>,
    %c4_48 = arith.constant 4 : index
    %c0_49 = arith.constant 0 : index
    %139 = vector.load %arg6[%c4_48, %c0_49] : memref<10x32xf32, #tpu.memory_space<vmem>>, vector<2x32xf32>
    tpu.vector_store %arg6[%c4_48, %c0_49], %137 {strides = array<i32>} : memref<10x32xf32, #tpu.memory_space<vmem>>, vector<2x32xf32>,
    %cst_50 = arith.constant dense<0.000000e+00> : vector<2x128xf32>
    %140 = tpu.matmul %120, %1, %cst_50 {dimension_numbers = #tpu.dot_dimension_numbers<[1], [0], [0], [1], [0, 0, 1, 1], [], []>} : vector<2x32xf32>, vector<32x128xf32>, vector<2x128xf32> -> vector<2x128xf32>
    %141 = arith.addf %26, %140 : vector<2x128xf32>
    %142 = arith.negf %141 : vector<2x128xf32>
    %143 = math.exp %142 : vector<2x128xf32>
    %cst_51 = arith.constant 1.000000e+00 : f32
    %144 = vector.broadcast %cst_51 : f32 to vector<2x128xf32>
    %145 = arith.addf %144, %143 : vector<2x128xf32>
    %146 = arith.divf %144, %145 : vector<2x128xf32>
    %147 = math.tanh %141 : vector<2x128xf32>
    %148 = vector.extract_strided_slice %146 {offsets = [0, 0], sizes = [2, 32], strides = [1, 1]} : vector<2x128xf32> to vector<2x32xf32>
    %149 = vector.extract_strided_slice %146 {offsets = [0, 32], sizes = [2, 32], strides = [1, 1]} : vector<2x128xf32> to vector<2x32xf32>
    %150 = vector.extract_strided_slice %147 {offsets = [0, 64], sizes = [2, 32], strides = [1, 1]} : vector<2x128xf32> to vector<2x32xf32>
    %151 = vector.extract_strided_slice %146 {offsets = [0, 96], sizes = [2, 32], strides = [1, 1]} : vector<2x128xf32> to vector<2x32xf32>
    %152 = arith.mulf %149, %118 : vector<2x32xf32>
    %153 = arith.mulf %148, %150 : vector<2x32xf32>
    %154 = arith.addf %152, %153 : vector<2x32xf32>
    %155 = math.tanh %154 : vector<2x32xf32>
    %156 = arith.mulf %151, %155 : vector<2x32xf32>
    %cst_52 = arith.constant dense<0.000000e+00> : vector<2x128xf32>
    %157 = tpu.matmul %137, %2, %cst_52 {dimension_numbers = #tpu.dot_dimension_numbers<[1], [0], [0], [1], [0, 0, 1, 1], [], []>} : vector<2x32xf32>, vector<32x128xf32>, vector<2x128xf32> -> vector<2x128xf32>
    %158 = arith.addf %21, %157 : vector<2x128xf32>
    %159 = arith.negf %158 : vector<2x128xf32>
    %160 = math.exp %159 : vector<2x128xf32>
    %cst_53 = arith.constant 1.000000e+00 : f32
    %161 = vector.broadcast %cst_53 : f32 to vector<2x128xf32>
    %162 = arith.addf %161, %160 : vector<2x128xf32>
    %163 = arith.divf %161, %162 : vector<2x128xf32>
    %164 = math.tanh %158 : vector<2x128xf32>
    %165 = vector.extract_strided_slice %163 {offsets = [0, 0], sizes = [2, 32], strides = [1, 1]} : vector<2x128xf32> to vector<2x32xf32>
    %166 = vector.extract_strided_slice %163 {offsets = [0, 32], sizes = [2, 32], strides = [1, 1]} : vector<2x128xf32> to vector<2x32xf32>
    %167 = vector.extract_strided_slice %164 {offsets = [0, 64], sizes = [2, 32], strides = [1, 1]} : vector<2x128xf32> to vector<2x32xf32>
    %168 = vector.extract_strided_slice %163 {offsets = [0, 96], sizes = [2, 32], strides = [1, 1]} : vector<2x128xf32> to vector<2x32xf32>
    %169 = arith.mulf %166, %135 : vector<2x32xf32>
    %170 = arith.mulf %165, %167 : vector<2x32xf32>
    %171 = arith.addf %169, %170 : vector<2x32xf32>
    %172 = math.tanh %171 : vector<2x32xf32>
    %173 = arith.mulf %168, %172 : vector<2x32xf32>
    %c6_54 = arith.constant 6 : index
    %c0_55 = arith.constant 0 : index
    %174 = vector.load %arg5[%c6_54, %c0_55] : memref<10x32xf32, #tpu.memory_space<vmem>>, vector<2x32xf32>
    tpu.vector_store %arg5[%c6_54, %c0_55], %156 {strides = array<i32>} : memref<10x32xf32, #tpu.memory_space<vmem>>, vector<2x32xf32>,
    %c2_56 = arith.constant 2 : index
    %c0_57 = arith.constant 0 : index
    %175 = vector.load %arg6[%c2_56, %c0_57] : memref<10x32xf32, #tpu.memory_space<vmem>>, vector<2x32xf32>
    tpu.vector_store %arg6[%c2_56, %c0_57], %173 {strides = array<i32>} : memref<10x32xf32, #tpu.memory_space<vmem>>, vector<2x32xf32>,
    %cst_58 = arith.constant dense<0.000000e+00> : vector<2x128xf32>
    %176 = tpu.matmul %156, %1, %cst_58 {dimension_numbers = #tpu.dot_dimension_numbers<[1], [0], [0], [1], [0, 0, 1, 1], [], []>} : vector<2x32xf32>, vector<32x128xf32>, vector<2x128xf32> -> vector<2x128xf32>
    %177 = arith.addf %29, %176 : vector<2x128xf32>
    %178 = arith.negf %177 : vector<2x128xf32>
    %179 = math.exp %178 : vector<2x128xf32>
    %cst_59 = arith.constant 1.000000e+00 : f32
    %180 = vector.broadcast %cst_59 : f32 to vector<2x128xf32>
    %181 = arith.addf %180, %179 : vector<2x128xf32>
    %182 = arith.divf %180, %181 : vector<2x128xf32>
    %183 = math.tanh %177 : vector<2x128xf32>
    %184 = vector.extract_strided_slice %182 {offsets = [0, 0], sizes = [2, 32], strides = [1, 1]} : vector<2x128xf32> to vector<2x32xf32>
    %185 = vector.extract_strided_slice %182 {offsets = [0, 32], sizes = [2, 32], strides = [1, 1]} : vector<2x128xf32> to vector<2x32xf32>
    %186 = vector.extract_strided_slice %183 {offsets = [0, 64], sizes = [2, 32], strides = [1, 1]} : vector<2x128xf32> to vector<2x32xf32>
    %187 = vector.extract_strided_slice %182 {offsets = [0, 96], sizes = [2, 32], strides = [1, 1]} : vector<2x128xf32> to vector<2x32xf32>
    %188 = arith.mulf %185, %154 : vector<2x32xf32>
    %189 = arith.mulf %184, %186 : vector<2x32xf32>
    %190 = arith.addf %188, %189 : vector<2x32xf32>
    %191 = math.tanh %190 : vector<2x32xf32>
    %192 = arith.mulf %187, %191 : vector<2x32xf32>
    %cst_60 = arith.constant dense<0.000000e+00> : vector<2x128xf32>
    %193 = tpu.matmul %173, %2, %cst_60 {dimension_numbers = #tpu.dot_dimension_numbers<[1], [0], [0], [1], [0, 0, 1, 1], [], []>} : vector<2x32xf32>, vector<32x128xf32>, vector<2x128xf32> -> vector<2x128xf32>
    %194 = arith.addf %18, %193 : vector<2x128xf32>
    %195 = arith.negf %194 : vector<2x128xf32>
    %196 = math.exp %195 : vector<2x128xf32>
    %cst_61 = arith.constant 1.000000e+00 : f32
    %197 = vector.broadcast %cst_61 : f32 to vector<2x128xf32>
    %198 = arith.addf %197, %196 : vector<2x128xf32>
    %199 = arith.divf %197, %198 : vector<2x128xf32>
    %200 = math.tanh %194 : vector<2x128xf32>
    %201 = vector.extract_strided_slice %199 {offsets = [0, 0], sizes = [2, 32], strides = [1, 1]} : vector<2x128xf32> to vector<2x32xf32>
    %202 = vector.extract_strided_slice %199 {offsets = [0, 32], sizes = [2, 32], strides = [1, 1]} : vector<2x128xf32> to vector<2x32xf32>
    %203 = vector.extract_strided_slice %200 {offsets = [0, 64], sizes = [2, 32], strides = [1, 1]} : vector<2x128xf32> to vector<2x32xf32>
    %204 = vector.extract_strided_slice %199 {offsets = [0, 96], sizes = [2, 32], strides = [1, 1]} : vector<2x128xf32> to vector<2x32xf32>
    %205 = arith.mulf %202, %171 : vector<2x32xf32>
    %206 = arith.mulf %201, %203 : vector<2x32xf32>
    %207 = arith.addf %205, %206 : vector<2x32xf32>
    %208 = math.tanh %207 : vector<2x32xf32>
    %209 = arith.mulf %204, %208 : vector<2x32xf32>
    %c8_62 = arith.constant 8 : index
    %c0_63 = arith.constant 0 : index
    %210 = vector.load %arg5[%c8_62, %c0_63] : memref<10x32xf32, #tpu.memory_space<vmem>>, vector<2x32xf32>
    tpu.vector_store %arg5[%c8_62, %c0_63], %192 {strides = array<i32>} : memref<10x32xf32, #tpu.memory_space<vmem>>, vector<2x32xf32>,
    %c0_64 = arith.constant 0 : index
    %c0_65 = arith.constant 0 : index
    %211 = vector.load %arg6[%c0_64, %c0_65] : memref<10x32xf32, #tpu.memory_space<vmem>>, vector<2x32xf32>
    tpu.vector_store %arg6[%c0_64, %c0_65], %209 {strides = array<i32>} : memref<10x32xf32, #tpu.memory_space<vmem>>, vector<2x32xf32>,
    %c0_66 = arith.constant 0 : index
    %c0_67 = arith.constant 0 : index
    %212 = vector.load %arg5[%c0_66, %c0_67] : memref<10x32xf32, #tpu.memory_space<vmem>>, vector<10x32xf32>
    %c0_68 = arith.constant 0 : index
    %c0_69 = arith.constant 0 : index
    %213 = vector.load %arg6[%c0_68, %c0_69] : memref<10x32xf32, #tpu.memory_space<vmem>>, vector<10x32xf32>
    %cst_70 = arith.constant dense<0.000000e+00> : vector<10x128xf32>
    %214 = tpu.matmul %212, %4, %cst_70 {dimension_numbers = #tpu.dot_dimension_numbers<[1], [0], [0], [1], [0, 0, 1, 1], [], []>} : vector<10x32xf32>, vector<32x128xf32>, vector<10x128xf32> -> vector<10x128xf32>
    %cst_71 = arith.constant dense<0.000000e+00> : vector<10x128xf32>
    %215 = tpu.matmul %213, %5, %cst_71 {dimension_numbers = #tpu.dot_dimension_numbers<[1], [0], [0], [1], [0, 0, 1, 1], [], []>} : vector<10x32xf32>, vector<32x128xf32>, vector<10x128xf32> -> vector<10x128xf32>
    %216 = arith.addf %214, %215 : vector<10x128xf32>
    %217 = vector.broadcast %8 : vector<1x128xf32> to vector<10x128xf32>
    %218 = arith.addf %216, %217 : vector<10x128xf32>
    %219 = math.tanh %218 : vector<10x128xf32>
    %220 = vector.broadcast %9 : vector<1x128xf32> to vector<10x128xf32>
    %221 = arith.mulf %219, %220 : vector<10x128xf32>
    %cst_72 = arith.constant dense<0.000000e+00> : vector<10xf32>
    %222 = vector.multi_reduction <add>, %221, %cst_72 [1] : vector<10x128xf32> to vector<10xf32>
    %223 = vector.shape_cast %222 : vector<10xf32> to vector<10x1xf32>
    %c0_73 = arith.constant 0 : index
    %c0_74 = arith.constant 0 : index
    %224 = vector.load %arg7[%c0_73, %c0_74] : memref<10x1xf32, #tpu.memory_space<vmem>>, vector<10x1xf32>
    tpu.vector_store %arg7[%c0_73, %c0_74], %223 {strides = array<i32>} : memref<10x1xf32, #tpu.memory_space<vmem>>, vector<10x1xf32>,
    %c0_75 = arith.constant 0 : index
    %c0_76 = arith.constant 0 : index
    %225 = vector.load %arg7[%c0_75, %c0_76] : memref<10x1xf32, #tpu.memory_space<vmem>>, vector<2x1xf32>
    %c2_77 = arith.constant 2 : index
    %c0_78 = arith.constant 0 : index
    %226 = vector.load %arg7[%c2_77, %c0_78] : memref<10x1xf32, #tpu.memory_space<vmem>>, vector<2x1xf32>
    %c4_79 = arith.constant 4 : index
    %c0_80 = arith.constant 0 : index
    %227 = vector.load %arg7[%c4_79, %c0_80] : memref<10x1xf32, #tpu.memory_space<vmem>>, vector<2x1xf32>
    %c6_81 = arith.constant 6 : index
    %c0_82 = arith.constant 0 : index
    %228 = vector.load %arg7[%c6_81, %c0_82] : memref<10x1xf32, #tpu.memory_space<vmem>>, vector<2x1xf32>
    %c8_83 = arith.constant 8 : index
    %c0_84 = arith.constant 0 : index
    %229 = vector.load %arg7[%c8_83, %c0_84] : memref<10x1xf32, #tpu.memory_space<vmem>>, vector<2x1xf32>
    %230 = arith.maximumf %225, %226 : vector<2x1xf32>
    %231 = arith.maximumf %230, %227 : vector<2x1xf32>
    %232 = arith.maximumf %231, %228 : vector<2x1xf32>
    %233 = arith.maximumf %232, %229 : vector<2x1xf32>
    %234 = arith.subf %225, %233 : vector<2x1xf32>
    %235 = math.exp %234 : vector<2x1xf32>
    %236 = arith.subf %226, %233 : vector<2x1xf32>
    %237 = math.exp %236 : vector<2x1xf32>
    %238 = arith.subf %227, %233 : vector<2x1xf32>
    %239 = math.exp %238 : vector<2x1xf32>
    %240 = arith.subf %228, %233 : vector<2x1xf32>
    %241 = math.exp %240 : vector<2x1xf32>
    %242 = arith.subf %229, %233 : vector<2x1xf32>
    %243 = math.exp %242 : vector<2x1xf32>
    %244 = arith.addf %235, %237 : vector<2x1xf32>
    %245 = arith.addf %244, %239 : vector<2x1xf32>
    %246 = arith.addf %245, %241 : vector<2x1xf32>
    %247 = arith.addf %246, %243 : vector<2x1xf32>
    %cst_85 = arith.constant 1.000000e+00 : f32
    %248 = vector.broadcast %cst_85 : f32 to vector<2x1xf32>
    %249 = arith.divf %248, %247 : vector<2x1xf32>
    %250 = arith.mulf %235, %249 : vector<2x1xf32>
    %251 = arith.mulf %237, %249 : vector<2x1xf32>
    %252 = arith.mulf %239, %249 : vector<2x1xf32>
    %253 = arith.mulf %241, %249 : vector<2x1xf32>
    %254 = arith.mulf %243, %249 : vector<2x1xf32>
    %255 = vector.broadcast %250 : vector<2x1xf32> to vector<2x32xf32>
    %256 = arith.mulf %255, %48 : vector<2x32xf32>
    %257 = vector.broadcast %250 : vector<2x1xf32> to vector<2x32xf32>
    %258 = arith.mulf %257, %209 : vector<2x32xf32>
    %259 = vector.broadcast %251 : vector<2x1xf32> to vector<2x32xf32>
    %260 = arith.mulf %259, %84 : vector<2x32xf32>
    %261 = arith.addf %256, %260 : vector<2x32xf32>
    %262 = vector.broadcast %251 : vector<2x1xf32> to vector<2x32xf32>
    %263 = arith.mulf %262, %173 : vector<2x32xf32>
    %264 = arith.addf %258, %263 : vector<2x32xf32>
    %265 = vector.broadcast %252 : vector<2x1xf32> to vector<2x32xf32>
    %266 = arith.mulf %265, %120 : vector<2x32xf32>
    %267 = arith.addf %261, %266 : vector<2x32xf32>
    %268 = vector.broadcast %252 : vector<2x1xf32> to vector<2x32xf32>
    %269 = arith.mulf %268, %137 : vector<2x32xf32>
    %270 = arith.addf %264, %269 : vector<2x32xf32>
    %271 = vector.broadcast %253 : vector<2x1xf32> to vector<2x32xf32>
    %272 = arith.mulf %271, %156 : vector<2x32xf32>
    %273 = arith.addf %267, %272 : vector<2x32xf32>
    %274 = vector.broadcast %253 : vector<2x1xf32> to vector<2x32xf32>
    %275 = arith.mulf %274, %101 : vector<2x32xf32>
    %276 = arith.addf %270, %275 : vector<2x32xf32>
    %277 = vector.broadcast %254 : vector<2x1xf32> to vector<2x32xf32>
    %278 = arith.mulf %277, %192 : vector<2x32xf32>
    %279 = arith.addf %273, %278 : vector<2x32xf32>
    %280 = vector.broadcast %254 : vector<2x1xf32> to vector<2x32xf32>
    %281 = arith.mulf %280, %65 : vector<2x32xf32>
    %282 = arith.addf %276, %281 : vector<2x32xf32>
    %cst_86 = arith.constant dense<0.000000e+00> : vector<2x128xf32>
    %283 = tpu.matmul %279, %6, %cst_86 {dimension_numbers = #tpu.dot_dimension_numbers<[1], [0], [0], [1], [0, 0, 1, 1], [], []>} : vector<2x32xf32>, vector<32x128xf32>, vector<2x128xf32> -> vector<2x128xf32>
    %cst_87 = arith.constant dense<0.000000e+00> : vector<2x128xf32>
    %284 = tpu.matmul %282, %7, %cst_87 {dimension_numbers = #tpu.dot_dimension_numbers<[1], [0], [0], [1], [0, 0, 1, 1], [], []>} : vector<2x32xf32>, vector<32x128xf32>, vector<2x128xf32> -> vector<2x128xf32>
    %285 = arith.addf %283, %284 : vector<2x128xf32>
    %286 = vector.broadcast %10 : vector<1x128xf32> to vector<2x128xf32>
    %287 = arith.addf %285, %286 : vector<2x128xf32>
    %288 = vector.extract_strided_slice %287 {offsets = [0, 0], sizes = [2, 32], strides = [1, 1]} : vector<2x128xf32> to vector<2x32xf32>
    %c0_88 = arith.constant 0 : index
    %c0_89 = arith.constant 0 : index
    %289 = vector.load %arg3[%c0_88, %c0_89] : memref<2x32xf32, #tpu.memory_space<vmem>>, vector<2x32xf32>
    tpu.vector_store %arg3[%c0_88, %c0_89], %288 {strides = array<i32>} : memref<2x32xf32, #tpu.memory_space<vmem>>, vector<2x32xf32>,
    return
  }
}

</mosaic_0001>

<bundles_post_ra>
// kernel: lstm_model_forward.1
= control target key start
LH: loop header
LB: loop body
LE: loop exit
PB: predicated region body
PF: predicated region fallthrough
CT: control target
= control target key end

     0   :  { %8 = vsyncpa [#allocation7], 0  ;;  %s2507_s0 = inlined_call_operand.vmem [shape: f32[10,32], index: 0, kind: input, shape index: {}]   ;;  %s2508_s1 = inlined_call_operand.hbm [shape: f32[65,256], index: 1, kind: input, shape index: {}]   ;;  %s2509_s2 = inlined_call_operand.hbm [shape: f32[131,128], index: 2, kind: input, shape index: {}]   ;;  %s2510_s3 = inlined_call_operand.hbm [shape: f32[2,32], index: 3, kind: output, shape index: {}]  }
   0x1   :  { %9 = vsyncpa [#allocation10], 0 }
   0x2   :  { %10 = vsyncpa [#allocation8], 0  ;;  %s2176_s12 = smov [#allocation6]  }
   0x3   :  { %s18_s13 = sshll.u32 %s2176_s12, 4  ;;  %s19_s13 = int_to_ptr.vmem [resolvable:$true] %s18_s13 }
   0x4   :  { %s2118_s14 = scalar_lea.vmem %s19_s13, 2304  ;;  %p2123_p1 = scmp.lt.s32.totalorder %s19_s13, %s19_s13 }
   0x5   :  { %p2119_p0 = scmp.ne.s32.totalorder %s19_s13, %s2118_s14  ;;  %p2124_p2 = scmp.lt.s32.totalorder %s2118_s14, %s2118_s14 }
   0x7   :  { %p2125_p3 = por %p2124_p2, %p2123_p1 }
   0x9   :  { %p2126_p4 = pnand %p2125_p3, %p2119_p0 }
   0xb   :  { %2129 = shalt.err (!%p2126_p4)
}
   0xc   :  { %s2177_s15 = smov 256   ;;  %s2178_s16 = smov 16  }
   0xd   :  { %24 = dma.hbm_to_vmem [thread:$0]  %s2508_s1, 2304, %s19_s13, [#allocation7], %s2177_s15, %s2177_s15, %s2178_s16  }
   0xe   :  { %s2179_s19 = smov [#allocation9]  }
   0xf   :  { %s30_s20 = sshll.u32 %s2179_s19, 4  ;;  %s31_s20 = int_to_ptr.vmem [resolvable:$true] %s30_s20 }
  0x10   :  { %s2138_s21 = scalar_lea.vmem %s31_s20, 2176  ;;  %p2143_p6 = scmp.lt.s32.totalorder %s31_s20, %s31_s20 }
  0x11   :  { %p2139_p5 = scmp.ne.s32.totalorder %s31_s20, %s2138_s21  ;;  %p2144_p7 = scmp.lt.s32.totalorder %s2138_s21, %s2138_s21 }
  0x13   :  { %p2145_p8 = por %p2144_p7, %p2143_p6 }
  0x15   :  { %p2146_p9 = pnand %p2145_p8, %p2139_p5 }
  0x17   :  { %2149 = shalt.err (!%p2146_p9)
}
  0x18   :  { %s2180_s22 = smov 128   ;;  %s2181_s23 = smov 8  }
  0x19   :  { %36 = dma.hbm_to_vmem [thread:$0]  %s2509_s2, 2176, %s31_s20, [#allocation10], %s2180_s22, %s2180_s22, %s2181_s23  }
  0x1a   :  { %2170 = dma.done.wait [#allocation7], 2304  }
  0x1b   :  { %2171 = vsyncadd [#allocation7], 4294964992 }
  0x1c   :  { %2172 = dma.done.wait [#allocation10], 2176  }
  0x1d   :  { %2173 = vsyncadd [#allocation10], 4294965120  ;;  %v2182_v0 = vmov 0.0   ;;  %vm2183_vm0 = vmmov 0   ;;  %v50_v1 = vld [vmem:[#allocation6 + $0x38] sm:$0xff]  ;;  %v49_v2 = vld [vmem:[#allocation6 + $0x30] sm:$0xff]  ;;  %v83_v19 = vlaneseq }
  0x1e   :  { %164 = vmatprep.mubr.f32.mxu0 %v2182_v0  ;;  %1845 = vmatprep.subr.mxu1 %v2182_v0  ;;  %v48_v3 = vld [vmem:[#allocation6 + $0x28] sm:$0xff]  ;;  %v47_v4 = vld [vmem:[#allocation6 + $0x20] sm:$0xff]  ;;  %v46_v5 = vld [vmem:[#allocation6 + $0x18] sm:$0xff]  ;;  %vm93_vm1 = vcmask 261120   ;;  %s2185_s28 = smov 32   ;;  %vm388_vm2 = vcmask 254976  }
  0x1f   :  { %1853 = vmatprep.mubr.msk.f32.mxu1 %vm2183_vm0, %v2182_v0  ;;  %124 = vmatprep.subr.mxu0 %v50_v1  ;;  %v45_v6 = vld [vmem:[#allocation6 + $0x10] sm:$0xff]  ;;  %v2221_v8 = vld [vmem:[#allocation6 + $0x60] sm:$0xff]  ;;  %v44_v9 = vld [vmem:[#allocation6 + $0x8] sm:$0xff]  ;;  %v84_v20 = vshrl.u32 %v83_v19, 7  ;;  %vm605_vm3 = vcmask 257026   ;;  %vm829_vm4 = vcmask 259076  }
  0x20   :  { %125 = vmatpush1.msra.mxu0 %v49_v2  ;;  %v2219_v7 = vld [vmem:[#allocation6 + $0x70] sm:$0xff]  ;;  %v43_v10 = vld [vmem:[#allocation6] sm:$0xff]  ;;  %v2232_v13 = vld [vmem:[#allocation6 + $0x78] sm:$0xff]  ;;  %vm611_vm5 = vcmask 261126   ;;  %vm1456_vm6 = vcmask 1041408   ;;  %vm1462_vm7 = vcmask 1024  }
  0x21   :  { %126 = vmatprep.subr.mxu0 %v48_v3  ;;  %1846 = vmatpush3.msra.mxu1 %v2219_v7  ;;  %v2225_v11 = vld [vmem:[#allocation6 + $0x50] sm:$0xff]  ;;  %v2237_v14 = vld [vmem:[#allocation6 + $0x40] sm:$0xff]  ;;  %v2239_v15 = vld [vmem:[#allocation6 + $0x68] sm:$0xff]  ;;  %v85_v21 = vsub.s32 0, %v84_v20  ;;  %v89_v23 = vsub.s32 1, %v84_v20  ;;  %vm1460_vm8 = vcmask 7168  }
  0x22   :  { %127 = vmatpush1.msra.mxu0 %v47_v4  ;;  %1847 = vmatprep.subr.mxu1 %v2182_v0  ;;  %v80_v12 = vld [vmem:[%s2507_s0] sm:$0xff]  ;;  %v81_v16 = vld [vmem:[%s2507_s0 + $0x8] sm:$0x3]  ;;  %v2255_v18 = vld [vmem:[#allocation6 + $0x48] sm:$0xff]  ;;  %s2184_s0 = smov 64   ;;  %s2187_s29 = smov 96  }
  0x23   :  { %128 = vmatprep.subr.mxu0 %v46_v5  ;;  %1848 = vmatpush3.msra.mxu1 %v2221_v8  ;;  %v2250_v17 = vld [vmem:[#allocation6 + $0x58] sm:$0xff]  ;;  %v60_v22 = vld [vmem:[#allocation6 + $0x80] ss:$8 sm:$0x3]  ;;  %s2188_s30 = smov [#allocation11]  }
  0x24   :  { %129 = vmatpush1.msra.mxu0 %v45_v6  ;;  %1849 = vmatprep.subr.mxu1 %v2182_v0  ;;  %v86_v24 = vrot.slane %v60_v22, %v85_v21  ;;  %v90_v25 = vrot.slane %v60_v22, %v89_v23  ;;  %s1734_s4 = sshll.u32 %s2188_s30, 4  ;;  %s1735_s4 = int_to_ptr.vmem [resolvable:$true] %s1734_s4 }
  0x25   :  { %130 = vmatprep.subr.mxu0 %v44_v9  ;;  %1850 = vmatpush3.msra.mxu1 %v2225_v11  ;;  %s2150_s5 = scalar_lea.vmem %s1735_s4, 32  ;;  %p2155_p11 = scmp.lt.s32.totalorder %s1735_s4, %s1735_s4 }
  0x26   :  { %131 = vmatpush1.msra.mxu0 %v43_v10  ;;  %1851 = vmatprep.subr.mxu1 %v2182_v0  ;;  %p2151_p10 = scmp.ne.s32.totalorder %s1735_s4, %s2150_s5  ;;  %p2156_p12 = scmp.lt.s32.totalorder %s2150_s5, %s2150_s5 }
  0x27   :  { %1744 = vmatmul.mubr.msk.f32.vlgmr.msra.gmra.mxu0 %vm93_vm1, %v80_v12  ;;  %1856 = vmatprep.subr.mxu0 %v2182_v0 }
  0x28   :  { %170 = vmatprep.mubr.f32.mxu0 %v2182_v0  ;;  %1857 = vmatpush3.msra.mxu0 %v2232_v13  ;;  %p2157_p13 = por %p2156_p12, %p2155_p11 }
  0x29   :  { %1858 = vmatprep.subr.mxu0 %v2182_v0  ;;  %1852 = vmatpush3.msra.mxu1 %v2237_v14 }
  0x2a   :  { %1859 = vmatpush3.msra.mxu0 %v2239_v15  ;;  %1854 = vmatmul.mubr.f32.vlgmr.msra.gmra.mxu1 %v2182_v0  ;;  %p2158_p0 = pnand %p2157_p13, %p2151_p10 }
  0x2b   :  { %1745 = vmatmul.mubr.msk.f32.gmra.mxu0 %vm93_vm1, %v81_v16  ;;  %1860 = vmatprep.subr.mxu0 %v2182_v0 }
  0x2c   :  { %1864 = vmatprep.mubr.msk.f32.mxu0 %vm2183_vm0, %v2182_v0  ;;  %1861 = vmatpush3.msra.mxu0 %v2250_v17 }
  0x2d   :  { %1867 = vmatprep.subr.mxu1 %v2182_v0  ;;  %1862 = vmatprep.subr.mxu0 %v2182_v0 }
  0x2e   :  { %1868 = vmatpush3.msra.mxu1 %v2219_v7  ;;  %1863 = vmatpush3.msra.mxu0 %v2255_v18 }
  0x2f   :  { %1869 = vmatprep.subr.mxu1 %v2182_v0  ;;  %1865 = vmatmul.mubr.f32.vlgmr.msra.gmra.mxu0 %v2182_v0 }
  0x30   :  { %1878 = vmatprep.subr.mxu0 %v2182_v0  ;;  %1870 = vmatpush3.msra.mxu1 %v2221_v8 }
  0x31   :  { %1879 = vmatpush3.msra.mxu0 %v2232_v13  ;;  %1886 = vmatprep.mubr.msk.f32.mxu0 %vm2183_vm0, %v2182_v0 }
  0x32   :  { %1880 = vmatprep.subr.mxu0 %v2182_v0  ;;  %1871 = vmatprep.subr.mxu1 %v2182_v0 }
  0x33   :  { %1881 = vmatpush3.msra.mxu0 %v2239_v15  ;;  %1872 = vmatpush3.msra.mxu1 %v2225_v11 }
  0x34   :  { %1882 = vmatprep.subr.mxu0 %v2182_v0  ;;  %1873 = vmatprep.subr.mxu1 %v2182_v0 }
  0x35   :  { %1883 = vmatpush3.msra.mxu0 %v2250_v17  ;;  %1874 = vmatpush3.msra.mxu1 %v2237_v14 }
  0x36   :  { %1884 = vmatprep.subr.mxu0 %v2182_v0  ;;  %1875 = vmatprep.mubr.msk.f32.mxu1 %vm2183_vm0, %v2182_v0 }
  0x37   :  { %1885 = vmatpush3.msra.mxu0 %v2255_v18  ;;  %1889 = vmatprep.subr.mxu1 %v2182_v0 }
  0x38   :  { %1900 = vmatprep.subr.mxu0 %v2182_v0 }
  0xe7   :  { %v166_v26 = vpop.f32.mrf.mxu0 }
  0xe8   :  { %v167_v27 = vadd.f32 %v166_v26, %v86_v24 }
  0xe9   :  { %v168_v28 = vpop.f32.mrf.mxu0 }
  0xea   :  { %177 = vst [vmem:[#allocation2 + $0x10] sm:$0xff] %v167_v27  ;;  %v169_v29 = vadd.f32 %v168_v28, %v90_v25  ;;  %v260_v31 = vpop.f32.mrf.mxu1 }
  0xeb   :  { %v172_v30 = vpop.f32.mrf.mxu0 }
  0xec   :  { %178 = vst [vmem:[#allocation2] sm:$0xff] %v169_v29  ;;  %v173_v32 = vadd.f32 %v172_v30, %v86_v24  ;;  %v1855_v34 = vpop.f32.mrf.mxu1 }
  0xed   :  { %v174_v33 = vpop.f32.mrf.mxu0 }
  0xee   :  { %179 = vst [vmem:[#allocation2 + $0x18] sm:$0x3] %v173_v32  ;;  %v175_v35 = vadd.f32 %v174_v33, %v90_v25 }
  0xef   :  { %v355_v36 = vpop.f32.mrf.mxu0 }
  0xf0   :  { %180 = vst [vmem:[#allocation2 + $0x8] sm:$0x3] %v175_v35 }
  0xf1   :  { %v1866_v37 = vpop.f32.mrf.mxu0  ;;  %v181_v38 = vld [vmem:[#allocation2 + $0x10] sm:$0x3]  ;;  %v183_v22 = vld [vmem:[#allocation2 + $0x10] sm:$0xc] }
  0xf2   :  { %v264_v41 = vadd.f32 %v260_v31, %v181_v38 }
  0xf3   :  { %v188_v12 = vld [vmem:[#allocation2] sm:$0xc0] }
  0xf4   :  { %v1746_v45 = vmul.f32 -1.442695, %v264_v41 }
  0xf7   :  { %v190_v39 = vld [vmem:[#allocation2 + $0x8] sm:$0x3] }
  0xf8   :  { %v359_v40 = vadd.f32 %v355_v36, %v190_v39 }
  0xfa   :  { %2014 = vtanh.f32 %v359_v40  ;;  %v1747_v44 = vmul.f32 -1.442695, %v359_v40 }
  0xfb   :  { %2016 = vtanh.f32 %v264_v41 }
  0xfc   :  { %2018 = vpow2.f32 %v1747_v44 }
  0xfd   :  { %2020 = vpow2.f32 %v1746_v45 }
 0x107   :  { %v2015_v42 = vpop.eup %2014 }
 0x108   :  { %369 = vrot.lane.b32.xlu0 %v2015_v42, %s2184_s0  ;;  %v2017_v43 = vpop.eup %2016 }
 0x109   :  { %v2019_v46 = vpop.eup %2018 }
 0x10a   :  { %v363_v47 = vadd.f32 1.0, %v2019_v46  ;;  %v2021_v48 = vpop.eup %2020 }
 0x10b   :  { %v268_v49 = vadd.f32 1.0, %v2021_v48 }
 0x10c   :  { %274 = vrot.lane.b32.xlu0 %v2017_v43, %s2184_s0  ;;  %2022 = vrcp.f32 %v363_v47 }
 0x10d   :  { %2024 = vrcp.f32 %v268_v49 }
 0x119   :  { %v2023_v50 = vpop.eup %2022 }
 0x11a   :  { %v2025_v53 = vpop.eup %2024  ;;  %v367_v56 = vmul.f32 0.0, %v2023_v50 }
 0x11b   :  { %v272_v59 = vmul.f32 0.0, %v2025_v53 }
 0x17a   :  { %v370_v51 = vpop.permute.xlu0 %369 }
 0x17b   :  { %v372_v52 = vmul.f32 %v2023_v50, %v370_v51 }
 0x17d   :  { %374 = vrot.lane.b32.xlu1 %v372_v52, %s2185_s28 }
 0x17e   :  { %v275_v54 = vpop.permute.xlu0 %274 }
 0x17f   :  { %v277_v55 = vmul.f32 %v2025_v53, %v275_v54 }
 0x181   :  { %279 = vrot.lane.b32.xlu1 %v277_v55, %s2185_s28 }
 0x1ef   :  { %v375_v57 = vpop.permute.xlu1 %374 }
 0x1f0   :  { %v2289_v58 = vadd.f32 %v375_v57, %v367_v56 }
 0x1f2   :  { %2026 = vtanh.f32 %v2289_v58  ;;  %v582_v39 = vrot.slane %v2289_v58, 2 }
 0x1f3   :  { %v280_v60 = vpop.permute.xlu1 %279 }
 0x1f4   :  { %v2292_v61 = vadd.f32 %v280_v60, %v272_v59  ;;  %v186_v59 = vld [vmem:[#allocation2] sm:$0x30] }
 0x1f6   :  { %2028 = vtanh.f32 %v2292_v61  ;;  %v479_v42 = vrot.slane %v2292_v61, 6 }
 0x1ff   :  { %v2027_v62 = vpop.eup %2026 }
 0x200   :  { %380 = vrot.lane.b32.xlu0 %v2027_v62, %s2184_s0 }
 0x203   :  { %v2029_v63 = vpop.eup %2028 }
 0x204   :  { %285 = vrot.lane.b32.xlu1 %v2029_v63, %s2184_s0 }
 0x272   :  { %v381_v1 = vpop.permute.xlu0 %380 }
 0x273   :  { %v2297_v2 = vmul.f32 %v2023_v50, %v381_v1  ;;  %v185_v1 = vld [vmem:[#allocation2 + $0x10] sm:$0x30] }
 0x275   :  { %391 = vrot.lane.b32.xlu0 %v2297_v2, %s2185_s28 }
 0x276   :  { %v286_v3 = vpop.permute.xlu1 %285 }
 0x277   :  { %v2301_v4 = vmul.f32 %v2025_v53, %v286_v3 }
 0x279   :  { %385 = vrot.lane.b32.xlu1 %v2301_v4, %s2185_s28 }
 0x2e7   :  { %v392_v5 = vpop.permute.xlu0 %391 }
 0x2e8   :  { %394 = vst.msk [vmem:[#allocation4 + $0x8] sm:$0x3] %vm388_vm2, %v392_v5  ;;  %1887 = vmatmul.mubr.msk.f32.vlgmr.msra.gmra.mxu0 %vm93_vm1, %v392_v5 }
 0x2e9   :  { %1901 = vmatpush3.msra.mxu0 %v2232_v13  ;;  %1908 = vmatprep.mubr.msk.f32.mxu0 %vm2183_vm0, %v2182_v0 }
 0x2ea   :  { %1902 = vmatprep.subr.mxu0 %v2182_v0 }
 0x2eb   :  { %v386_v6 = vpop.permute.xlu1 %385  ;;  %1903 = vmatpush3.msra.mxu0 %v2239_v15 }
 0x2ec   :  { %389 = vst.msk [vmem:[#allocation3] sm:$0x3] %vm388_vm2, %v386_v6  ;;  %1876 = vmatmul.mubr.msk.f32.vlgmr.msra.gmra.mxu1 %vm93_vm1, %v386_v6  ;;  %1904 = vmatprep.subr.mxu0 %v2182_v0 }
 0x2ed   :  { %1890 = vmatpush3.msra.mxu1 %v2219_v7  ;;  %1905 = vmatpush3.msra.mxu0 %v2250_v17 }
 0x2ee   :  { %1891 = vmatprep.subr.mxu1 %v2182_v0  ;;  %1906 = vmatprep.subr.mxu0 %v2182_v0 }
 0x2ef   :  { %1907 = vmatpush3.msra.mxu0 %v2255_v18  ;;  %1892 = vmatpush3.msra.mxu1 %v2221_v8 }
 0x2f0   :  { %1893 = vmatprep.subr.mxu1 %v2182_v0  ;;  %1897 = vmatprep.mubr.msk.f32.mxu1 %vm2183_vm0, %v2182_v0 }
 0x2f1   :  { %1894 = vmatpush3.msra.mxu1 %v2225_v11  ;;  %1922 = vmatprep.subr.mxu0 %v2182_v0 }
 0x2f2   :  { %1895 = vmatprep.subr.mxu1 %v2182_v0 }
 0x2f3   :  { %1896 = vmatpush3.msra.mxu1 %v2237_v14 }
 0x2f4   :  { %1911 = vmatprep.subr.mxu1 %v2182_v0 }
 0x3a8   :  { %v566_v9 = vpop.f32.mrf.mxu0 }
 0x3a9   :  { %v571_v10 = vrot.slane %v566_v9, 2 }
 0x3aa   :  { %v1888_v16 = vpop.f32.mrf.mxu0 }
 0x3ab   :  { %v573_v19 = vadd.f32 %v571_v10, %v188_v12 }
 0x3ac   :  { %v463_v20 = vpop.f32.mrf.mxu1 }
 0x3ad   :  { %2030 = vtanh.f32 %v573_v19  ;;  %v468_v21 = vrot.slane %v463_v20, 6  ;;  %v1751_v27 = vmul.f32 -1.442695, %v573_v19 }
 0x3ae   :  { %v1877_v23 = vpop.f32.mrf.mxu1 }
 0x3af   :  { %v470_v24 = vadd.f32 %v468_v21, %v183_v22 }
 0x3b1   :  { %2032 = vtanh.f32 %v470_v24  ;;  %v1749_v28 = vmul.f32 -1.442695, %v470_v24 }
 0x3b2   :  { %2034 = vpow2.f32 %v1751_v27 }
 0x3b3   :  { %2036 = vpow2.f32 %v1749_v28 }
 0x3ba   :  { %v2031_v25 = vpop.eup %2030 }
 0x3bb   :  { %586 = vrot.lane.b32.xlu0 %v2031_v25, %s2184_s0 }
 0x3be   :  { %v2033_v26 = vpop.eup %2032 }
 0x3bf   :  { %483 = vrot.lane.b32.xlu1 %v2033_v26, %s2184_s0  ;;  %v2035_v29 = vpop.eup %2034 }
 0x3c0   :  { %v577_v30 = vadd.f32 1.0, %v2035_v29  ;;  %v2037_v31 = vpop.eup %2036 }
 0x3c1   :  { %v474_v32 = vadd.f32 1.0, %v2037_v31 }
 0x3c2   :  { %2038 = vrcp.f32 %v577_v30 }
 0x3c3   :  { %2040 = vrcp.f32 %v474_v32 }
 0x3cf   :  { %v2039_v33 = vpop.eup %2038 }
 0x3d0   :  { %v2041_v36 = vpop.eup %2040  ;;  %v584_v40 = vmul.f32 %v2039_v33, %v582_v39 }
 0x3d1   :  { %v481_v44 = vmul.f32 %v2041_v36, %v479_v42 }
 0x42d   :  { %v587_v34 = vpop.permute.xlu0 %586 }
 0x42e   :  { %v589_v35 = vmul.f32 %v2039_v33, %v587_v34 }
 0x430   :  { %591 = vrot.lane.b32.xlu0 %v589_v35, %s2185_s28 }
 0x431   :  { %v484_v37 = vpop.permute.xlu1 %483 }
 0x432   :  { %v486_v38 = vmul.f32 %v2041_v36, %v484_v37 }
 0x434   :  { %488 = vrot.lane.b32.xlu1 %v486_v38, %s2185_s28 }
 0x4a2   :  { %v592_v41 = vpop.permute.xlu0 %591 }
 0x4a3   :  { %v2335_v43 = vadd.f32 %v592_v41, %v584_v40 }
 0x4a5   :  { %2042 = vtanh.f32 %v2335_v43  ;;  %v806_v28 = vrot.slane %v2335_v43, 2 }
 0x4a6   :  { %v489_v45 = vpop.permute.xlu1 %488 }
 0x4a7   :  { %v2338_v46 = vadd.f32 %v489_v45, %v481_v44 }
 0x4a9   :  { %2044 = vtanh.f32 %v2338_v46  ;;  %v700_v31 = vrot.slane %v2338_v46, 6 }
 0x4b2   :  { %v2043_v47 = vpop.eup %2042 }
 0x4b3   :  { %597 = vrot.lane.b32.xlu0 %v2043_v47, %s2184_s0 }
 0x4b6   :  { %v2045_v48 = vpop.eup %2044 }
 0x4b7   :  { %494 = vrot.lane.b32.xlu1 %v2045_v48, %s2184_s0 }
 0x525   :  { %v598_v49 = vpop.permute.xlu0 %597 }
 0x526   :  { %v2343_v50 = vmul.f32 %v2039_v33, %v598_v49 }
 0x528   :  { %v719_v51 = vrot.slane %v2343_v50, 6 }
 0x529   :  { %v495_v52 = vpop.permute.xlu1 %494 }
 0x52a   :  { %v2346_v53 = vmul.f32 %v2041_v36, %v495_v52  ;;  %720 = vrot.lane.b32.xlu0 %v719_v51, %s2185_s28 }
 0x52c   :  { %v613_v54 = vrot.slane %v2346_v53, 2 }
 0x52e   :  { %614 = vrot.lane.b32.xlu1 %v613_v54, %s2185_s28 }
 0x59c   :  { %v2351_v55 = vpop.permute.xlu0 %720 }
 0x59d   :  { %1909 = vmatmul.mubr.msk.f32.vlgmr.msra.gmra.mxu0 %vm93_vm1, %v2351_v55 }
 0x59e   :  { %1923 = vmatpush3.msra.mxu0 %v2232_v13  ;;  %1930 = vmatprep.mubr.msk.f32.mxu0 %vm2183_vm0, %v2182_v0 }
 0x59f   :  { %1924 = vmatprep.subr.mxu0 %v2182_v0 }
 0x5a0   :  { %v2359_v56 = vpop.permute.xlu1 %614  ;;  %1925 = vmatpush3.msra.mxu0 %v2239_v15 }
 0x5a1   :  { %1898 = vmatmul.mubr.msk.f32.vlgmr.msra.gmra.mxu1 %vm93_vm1, %v2359_v56  ;;  %1926 = vmatprep.subr.mxu0 %v2182_v0 }
 0x5a2   :  { %1912 = vmatpush3.msra.mxu1 %v2219_v7  ;;  %1927 = vmatpush3.msra.mxu0 %v2250_v17 }
 0x5a3   :  { %1913 = vmatprep.subr.mxu1 %v2182_v0  ;;  %1928 = vmatprep.subr.mxu0 %v2182_v0 }
 0x5a4   :  { %1929 = vmatpush3.msra.mxu0 %v2255_v18  ;;  %1914 = vmatpush3.msra.mxu1 %v2221_v8 }
 0x5a5   :  { %1915 = vmatprep.subr.mxu1 %v2182_v0  ;;  %1919 = vmatprep.mubr.msk.f32.mxu1 %vm2183_vm0, %v2182_v0 }
 0x5a6   :  { %1916 = vmatpush3.msra.mxu1 %v2225_v11  ;;  %1944 = vmatprep.subr.mxu0 %v2182_v0 }
 0x5a7   :  { %1917 = vmatprep.subr.mxu1 %v2182_v0 }
 0x5a8   :  { %1918 = vmatpush3.msra.mxu1 %v2237_v14 }
 0x5a9   :  { %1933 = vmatprep.subr.mxu1 %v2182_v0 }
 0x65d   :  { %v790_v57 = vpop.f32.mrf.mxu0 }
 0x65e   :  { %v795_v58 = vrot.slane %v790_v57, 4 }
 0x65f   :  { %v1910_v60 = vpop.f32.mrf.mxu0 }
 0x660   :  { %v797_v61 = vadd.f32 %v795_v58, %v186_v59 }
 0x661   :  { %v684_v62 = vpop.f32.mrf.mxu1 }
 0x662   :  { %2046 = vtanh.f32 %v797_v61  ;;  %v689_v63 = vrot.slane %v684_v62, 4  ;;  %v1755_v10 = vmul.f32 -1.442695, %v797_v61 }
 0x663   :  { %v1899_v3 = vpop.f32.mrf.mxu1 }
 0x664   :  { %v691_v5 = vadd.f32 %v689_v63, %v185_v1 }
 0x666   :  { %2048 = vtanh.f32 %v691_v5  ;;  %v1753_v12 = vmul.f32 -1.442695, %v691_v5 }
 0x667   :  { %2050 = vpow2.f32 %v1755_v10 }
 0x668   :  { %2052 = vpow2.f32 %v1753_v12 }
 0x66f   :  { %v2047_v6 = vpop.eup %2046 }
 0x670   :  { %810 = vrot.lane.b32.xlu0 %v2047_v6, %s2184_s0 }
 0x673   :  { %v2049_v9 = vpop.eup %2048 }
 0x674   :  { %704 = vrot.lane.b32.xlu1 %v2049_v9, %s2184_s0  ;;  %v2051_v16 = vpop.eup %2050 }
 0x675   :  { %v801_v19 = vadd.f32 1.0, %v2051_v16  ;;  %v2053_v20 = vpop.eup %2052 }
 0x676   :  { %v695_v21 = vadd.f32 1.0, %v2053_v20 }
 0x677   :  { %2054 = vrcp.f32 %v801_v19 }
 0x678   :  { %2056 = vrcp.f32 %v695_v21 }
 0x684   :  { %v2055_v22 = vpop.eup %2054 }
 0x685   :  { %v2057_v25 = vpop.eup %2056  ;;  %v808_v29 = vmul.f32 %v2055_v22, %v806_v28 }
 0x686   :  { %v702_v33 = vmul.f32 %v2057_v25, %v700_v31  ;;  %v182_v31 = vld [vmem:[#allocation2] sm:$0x3] }
 0x6e2   :  { %v811_v23 = vpop.permute.xlu0 %810 }
 0x6e3   :  { %v813_v24 = vmul.f32 %v2055_v22, %v811_v23 }
 0x6e5   :  { %815 = vrot.lane.b32.xlu0 %v813_v24, %s2185_s28 }
 0x6e6   :  { %v705_v26 = vpop.permute.xlu1 %704 }
 0x6e7   :  { %v707_v27 = vmul.f32 %v2057_v25, %v705_v26 }
 0x6e9   :  { %709 = vrot.lane.b32.xlu1 %v707_v27, %s2185_s28 }
 0x757   :  { %v816_v30 = vpop.permute.xlu0 %815 }
 0x758   :  { %v2385_v32 = vadd.f32 %v816_v30, %v808_v29 }
 0x75a   :  { %2058 = vtanh.f32 %v2385_v32  ;;  %v1029_v5 = vrot.slane %v2385_v32, 2 }
 0x75b   :  { %v710_v34 = vpop.permute.xlu1 %709 }
 0x75c   :  { %v2388_v35 = vadd.f32 %v710_v34, %v702_v33 }
 0x75e   :  { %2060 = vtanh.f32 %v2388_v35  ;;  %v923_v10 = vrot.slane %v2388_v35, 6  ;;  %v189_v35 = vld [vmem:[#allocation2 + $0x18] sm:$0x3] }
 0x767   :  { %v2059_v36 = vpop.eup %2058 }
 0x768   :  { %821 = vrot.lane.b32.xlu0 %v2059_v36, %s2184_s0 }
 0x76b   :  { %v2061_v37 = vpop.eup %2060 }
 0x76c   :  { %715 = vrot.lane.b32.xlu1 %v2061_v37, %s2184_s0 }
 0x7da   :  { %v822_v38 = vpop.permute.xlu0 %821 }
 0x7db   :  { %v2393_v39 = vmul.f32 %v2055_v22, %v822_v38 }
 0x7dd   :  { %v942_v40 = vrot.slane %v2393_v39, 4 }
 0x7de   :  { %v716_v41 = vpop.permute.xlu1 %715 }
 0x7df   :  { %v2396_v42 = vmul.f32 %v2057_v25, %v716_v41  ;;  %943 = vrot.lane.b32.xlu0 %v942_v40, %s2185_s28 }
 0x7e1   :  { %v836_v43 = vrot.slane %v2396_v42, 4 }
 0x7e3   :  { %837 = vrot.lane.b32.xlu1 %v836_v43, %s2185_s28 }
 0x851   :  { %v2401_v44 = vpop.permute.xlu0 %943 }
 0x852   :  { %1931 = vmatmul.mubr.msk.f32.vlgmr.msra.gmra.mxu0 %vm93_vm1, %v2401_v44 }
 0x853   :  { %1945 = vmatpush3.msra.mxu0 %v2232_v13  ;;  %1952 = vmatprep.mubr.msk.f32.mxu0 %vm2183_vm0, %v2182_v0 }
 0x854   :  { %1946 = vmatprep.subr.mxu0 %v2182_v0 }
 0x855   :  { %v2409_v45 = vpop.permute.xlu1 %837  ;;  %1947 = vmatpush3.msra.mxu0 %v2239_v15  ;;  %v184_v15 = vld [vmem:[#allocation2] sm:$0xc] }
 0x856   :  { %1920 = vmatmul.mubr.msk.f32.vlgmr.msra.gmra.mxu1 %vm93_vm1, %v2409_v45  ;;  %1948 = vmatprep.subr.mxu0 %v2182_v0 }
 0x857   :  { %1934 = vmatpush3.msra.mxu1 %v2219_v7  ;;  %1949 = vmatpush3.msra.mxu0 %v2250_v17 }
 0x858   :  { %1935 = vmatprep.subr.mxu1 %v2182_v0  ;;  %1950 = vmatprep.subr.mxu0 %v2182_v0 }
 0x859   :  { %1951 = vmatpush3.msra.mxu0 %v2255_v18  ;;  %1936 = vmatpush3.msra.mxu1 %v2221_v8  ;;  %v187_v8 = vld [vmem:[#allocation2 + $0x10] sm:$0xc0] }
 0x85a   :  { %1937 = vmatprep.subr.mxu1 %v2182_v0  ;;  %1941 = vmatprep.mubr.msk.f32.mxu1 %vm2183_vm0, %v2182_v0 }
 0x85b   :  { %1938 = vmatpush3.msra.mxu1 %v2225_v11 }
 0x85c   :  { %1939 = vmatprep.subr.mxu1 %v2182_v0 }
 0x85d   :  { %1940 = vmatpush3.msra.mxu1 %v2237_v14 }
 0x912   :  { %v1013_v7 = vpop.f32.mrf.mxu0 }
 0x913   :  { %v1018_v13 = vrot.slane %v1013_v7, 6 }
 0x914   :  { %v1932_v17 = vpop.f32.mrf.mxu0 }
 0x915   :  { %v1020_v46 = vadd.f32 %v1018_v13, %v184_v15 }
 0x916   :  { %v907_v47 = vpop.f32.mrf.mxu1 }
 0x917   :  { %2062 = vtanh.f32 %v1020_v46  ;;  %v912_v18 = vrot.slane %v907_v47, 2  ;;  %v1759_v52 = vmul.f32 -1.442695, %v1020_v46 }
 0x918   :  { %v1921_v48 = vpop.f32.mrf.mxu1 }
 0x919   :  { %v914_v49 = vadd.f32 %v912_v18, %v187_v8 }
 0x91b   :  { %2064 = vtanh.f32 %v914_v49  ;;  %v1757_v14 = vmul.f32 -1.442695, %v914_v49 }
 0x91c   :  { %2066 = vpow2.f32 %v1759_v52 }
 0x91d   :  { %2068 = vpow2.f32 %v1757_v14 }
 0x924   :  { %v2063_v51 = vpop.eup %2062 }
 0x925   :  { %1033 = vrot.lane.b32.xlu0 %v2063_v51, %s2184_s0 }
 0x928   :  { %v2065_v11 = vpop.eup %2064 }
 0x929   :  { %927 = vrot.lane.b32.xlu1 %v2065_v11, %s2184_s0  ;;  %v2067_v54 = vpop.eup %2066 }
 0x92a   :  { %v1024_v57 = vadd.f32 1.0, %v2067_v54  ;;  %v2069_v58 = vpop.eup %2068 }
 0x92b   :  { %v918_v59 = vadd.f32 1.0, %v2069_v58 }
 0x92c   :  { %2070 = vrcp.f32 %v1024_v57 }
 0x92d   :  { %2072 = vrcp.f32 %v918_v59 }
 0x939   :  { %v2071_v60 = vpop.eup %2070 }
 0x93a   :  { %v2073_v63 = vpop.eup %2072  ;;  %v1031_v6 = vmul.f32 %v2071_v60, %v1029_v5  ;;  %v63_v5 = vld [vmem:[#allocation9 + $0x10] sm:$0xff] }
 0x93b   :  { %v925_v16 = vmul.f32 %v2073_v63, %v923_v10 }
 0x997   :  { %v1034_v61 = vpop.permute.xlu0 %1033 }
 0x998   :  { %v1036_v62 = vmul.f32 %v2071_v60, %v1034_v61 }
 0x99a   :  { %1038 = vrot.lane.b32.xlu0 %v1036_v62, %s2185_s28 }
 0x99b   :  { %v928_v1 = vpop.permute.xlu1 %927 }
 0x99c   :  { %v930_v3 = vmul.f32 %v2073_v63, %v928_v1  ;;  %v67_v1 = vld [vmem:[#allocation9 + $0x30] sm:$0xff] }
 0x99e   :  { %932 = vrot.lane.b32.xlu1 %v930_v3, %s2185_s28  ;;  %v66_v3 = vld [vmem:[#allocation9 + $0x28] sm:$0xff] }
 0xa0c   :  { %v1039_v9 = vpop.permute.xlu0 %1038 }
 0xa0d   :  { %v1041_v12 = vadd.f32 %v1039_v9, %v1031_v6 }
 0xa0f   :  { %2074 = vtanh.f32 %v1041_v12  ;;  %v1245_v11 = vrot.slane %v1041_v12, 2 }
 0xa10   :  { %v933_v19 = vpop.permute.xlu1 %932 }
 0xa11   :  { %v935_v20 = vadd.f32 %v933_v19, %v925_v16 }
 0xa13   :  { %2076 = vtanh.f32 %v935_v20  ;;  %v1142_v54 = vrot.slane %v935_v20, 6 }
 0xa1c   :  { %v2075_v21 = vpop.eup %2074 }
 0xa1d   :  { %1044 = vrot.lane.b32.xlu0 %v2075_v21, %s2184_s0 }
 0xa20   :  { %v2077_v22 = vpop.eup %2076 }
 0xa21   :  { %938 = vrot.lane.b32.xlu1 %v2077_v22, %s2184_s0 }
 0xa8f   :  { %v1045_v23 = vpop.permute.xlu0 %1044 }
 0xa90   :  { %v1047_v24 = vmul.f32 %v2071_v60, %v1045_v23 }
 0xa92   :  { %v1161_v25 = vrot.slane %v1047_v24, 2 }
 0xa93   :  { %v939_v26 = vpop.permute.xlu1 %938 }
 0xa94   :  { %v941_v27 = vmul.f32 %v2073_v63, %v939_v26  ;;  %1162 = vrot.lane.b32.xlu0 %v1161_v25, %s2185_s28  ;;  %v68_v63 = vld [vmem:[#allocation9 + $0x38] sm:$0xff] }
 0xa95   :  { %1955 = vmatprep.subr.mxu1 %v68_v63 }
 0xa96   :  { %v1058_v28 = vrot.slane %v941_v27, 6 }
 0xa98   :  { %1059 = vrot.lane.b32.xlu1 %v1058_v28, %s2185_s28  ;;  %v1277_v28 = vld [vmem:[#allocation4 + $0x8] sm:$0x3] }
 0xb06   :  { %v2437_v29 = vpop.permute.xlu0 %1162 }
 0xb07   :  { %1953 = vmatmul.mubr.msk.f32.vlgmr.msra.gmra.mxu0 %vm93_vm1, %v2437_v29 }
 0xb0a   :  { %v2441_v30 = vpop.permute.xlu1 %1059 }
 0xb0b   :  { %1942 = vmatmul.mubr.msk.f32.vlgmr.msra.gmra.mxu1 %vm93_vm1, %v2441_v30 }
 0xb0c   :  { %1956 = vmatpush3.msra.mxu1 %v68_v63 }
 0xb0d   :  { %1957 = vmatprep.subr.mxu1 %v67_v1 }
 0xb0e   :  { %1958 = vmatpush3.msra.mxu1 %v67_v1 }
 0xb0f   :  { %1959 = vmatprep.subr.mxu1 %v66_v3 }
 0xb10   :  { %1960 = vmatpush3.msra.mxu1 %v66_v3 }
 0xbc7   :  { %v1232_v32 = vpop.f32.mrf.mxu0 }
 0xbc8   :  { %v1236_v33 = vadd.f32 %v1232_v32, %v182_v31 }
 0xbc9   :  { %v1954_v34 = vpop.f32.mrf.mxu0 }
 0xbca   :  { %2078 = vtanh.f32 %v1236_v33  ;;  %v1763_v43 = vmul.f32 -1.442695, %v1236_v33  ;;  %v1768_v33 = vld [vmem:[#allocation9 + $0x80] ss:$0 sm:$0xff] }
 0xbcb   :  { %v1129_v36 = vpop.f32.mrf.mxu1 }
 0xbcc   :  { %v1133_v37 = vadd.f32 %v1129_v36, %v189_v35 }
 0xbcd   :  { %v1943_v38 = vpop.f32.mrf.mxu1 }
 0xbce   :  { %2080 = vtanh.f32 %v1133_v37  ;;  %v1761_v7 = vmul.f32 -1.442695, %v1133_v37 }
 0xbcf   :  { %2082 = vpow2.f32 %v1763_v43  ;;  %v1769_v43 = vld [vmem:[#allocation9 + $0x81] ss:$0 sm:$0xff] }
 0xbd0   :  { %2084 = vpow2.f32 %v1761_v7 }
 0xbd7   :  { %v2079_v40 = vpop.eup %2078 }
 0xbd8   :  { %1249 = vrot.lane.b32.xlu0 %v2079_v40, %s2184_s0 }
 0xbdb   :  { %v2081_v41 = vpop.eup %2080 }
 0xbdc   :  { %1146 = vrot.lane.b32.xlu1 %v2081_v41, %s2184_s0  ;;  %v2083_v13 = vpop.eup %2082 }
 0xbdd   :  { %v1240_v15 = vadd.f32 1.0, %v2083_v13  ;;  %v2085_v17 = vpop.eup %2084 }
 0xbde   :  { %v1137_v46 = vadd.f32 1.0, %v2085_v17 }
 0xbdf   :  { %2086 = vrcp.f32 %v1240_v15 }
 0xbe0   :  { %2088 = vrcp.f32 %v1137_v46 }
 0xbec   :  { %v2087_v47 = vpop.eup %2086 }
 0xbed   :  { %v2089_v48 = vpop.eup %2088  ;;  %v1247_v52 = vmul.f32 %v2087_v47, %v1245_v11 }
 0xbee   :  { %v1144_v58 = vmul.f32 %v2089_v48, %v1142_v54 }
 0xc4a   :  { %v1250_v18 = vpop.permute.xlu0 %1249 }
 0xc4b   :  { %v1252_v8 = vmul.f32 %v2087_v47, %v1250_v18 }
 0xc4d   :  { %1254 = vrot.lane.b32.xlu0 %v1252_v8, %s2185_s28 }
 0xc4e   :  { %v1147_v49 = vpop.permute.xlu1 %1146 }
 0xc4f   :  { %v1149_v51 = vmul.f32 %v2089_v48, %v1147_v49 }
 0xc51   :  { %1151 = vrot.lane.b32.xlu1 %v1149_v51, %s2185_s28 }
 0xcbf   :  { %v1255_v14 = vpop.permute.xlu0 %1254 }
 0xcc0   :  { %v1257_v57 = vadd.f32 %v1255_v14, %v1247_v52 }
 0xcc2   :  { %2090 = vtanh.f32 %v1257_v57 }
 0xcc3   :  { %v1152_v59 = vpop.permute.xlu1 %1151 }
 0xcc4   :  { %v1154_v60 = vadd.f32 %v1152_v59, %v1144_v58 }
 0xcc6   :  { %2092 = vtanh.f32 %v1154_v60 }
 0xccf   :  { %v2091_v61 = vpop.eup %2090 }
 0xcd0   :  { %1260 = vrot.lane.b32.xlu0 %v2091_v61, %s2184_s0 }
 0xcd3   :  { %v2093_v62 = vpop.eup %2092 }
 0xcd4   :  { %602 = vrot.lane.b32.xlu0 %v2346_v53, %s2185_s28  ;;  %1157 = vrot.lane.b32.xlu1 %v2093_v62, %s2184_s0  ;;  %v64_v53 = vld [vmem:[#allocation9 + $0x18] sm:$0xff] }
 0xcd5   :  { %1966 = vmatprep.subr.mxu0 %v64_v53 }
 0xcd6   :  { %1967 = vmatpush3.msra.mxu0 %v64_v53 }
 0xcd7   :  { %1968 = vmatprep.subr.mxu0 %v63_v5 }
 0xcd8   :  { %826 = vrot.lane.b32.xlu0 %v2396_v42, %s2185_s28  ;;  %608 = vrot.lane.b32.xlu1 %v2343_v50, %s2185_s28  ;;  %v65_v42 = vld [vmem:[#allocation9 + $0x20] sm:$0xff]  ;;  %v62_v50 = vld [vmem:[#allocation9 + $0x8] sm:$0xff] }
 0xcd9   :  { %1961 = vmatprep.subr.mxu1 %v65_v42  ;;  %1969 = vmatpush3.msra.mxu0 %v63_v5 }
 0xcda   :  { %1962 = vmatpush3.msra.mxu1 %v65_v42  ;;  %1970 = vmatprep.subr.mxu0 %v62_v50 }
 0xcdb   :  { %1977 = vmatprep.subr.mxu1 %v2182_v0  ;;  %1971 = vmatpush3.msra.mxu0 %v62_v50 }
 0xcdc   :  { %1049 = vrot.lane.b32.xlu0 %v941_v27, %s2185_s28  ;;  %832 = vrot.lane.b32.xlu1 %v2393_v39, %s2185_s28  ;;  %v61_v39 = vld [vmem:[#allocation9] sm:$0xff] }
 0xcdd   :  { %1972 = vmatprep.subr.mxu0 %v61_v39 }
 0xcde   :  { %1973 = vmatpush3.msra.mxu0 %v61_v39 }
 0xcdf   :  { %1988 = vmatprep.subr.mxu0 %v2182_v0 }
 0xce0   :  { %1054 = vrot.lane.b32.xlu1 %v1047_v24, %s2185_s28 }
 0xd42   :  { %v1261_v6 = vpop.permute.xlu0 %1260 }
 0xd43   :  { %v2462_v9 = vmul.f32 %v2087_v47, %v1261_v6  ;;  %v2186_v47 = vmov 0  }
 0xd44   :  { %2013 = vset.pattern.permute.xlu1 %v2186_v47  ;;  %2012 = vset.pattern.permute.xlu0 %v2186_v47 }
 0xd45   :  { %1270 = vrot.lane.b32.xlu0 %v2462_v9, %s2185_s28 }
 0xd46   :  { %v603_v10 = vpop.permute.xlu0 %602  ;;  %v1158_v12 = vpop.permute.xlu1 %1157 }
 0xd47   :  { %606 = vst.msk [vmem:[#allocation3] sm:$0xc] %vm605_vm3, %v603_v10  ;;  %v2468_v16 = vmul.f32 %v2089_v48, %v1158_v12 }
 0xd49   :  { %1265 = vrot.lane.b32.xlu1 %v2468_v16, %s2185_s28 }
 0xd4a   :  { %v827_v19 = vpop.permute.xlu0 %826  ;;  %v609_v20 = vpop.permute.xlu1 %608 }
 0xd4b   :  { %830 = vst.msk [vmem:[#allocation3] sm:$0x30] %vm829_vm4, %v827_v19 }
 0xd4c   :  { %612 = vst.msk [vmem:[#allocation4] sm:$0xc0] %vm611_vm5, %v609_v20 }
 0xd4e   :  { %v1050_v21 = vpop.permute.xlu0 %1049  ;;  %v833_v22 = vpop.permute.xlu1 %832 }
 0xd4f   :  { %1052 = vst.msk [vmem:[#allocation3] sm:$0xc0] %vm611_vm5, %v1050_v21 }
 0xd50   :  { %835 = vst.msk [vmem:[#allocation4] sm:$0x30] %vm829_vm4, %v833_v22 }
 0xd52   :  { %v1055_v23 = vpop.permute.xlu1 %1054 }
 0xd53   :  { %1057 = vst.msk [vmem:[#allocation4] sm:$0xc] %vm605_vm3, %v1055_v23 }
 0xd56   :  { %v1274_v24 = vld [vmem:[#allocation3] sm:$0xff] }
 0xd57   :  { %1974 = vmatprep.mubr.msk.f32.mxu0 %vm93_vm1, %v1274_v24 }
 0xdb7   :  { %v1271_v25 = vpop.permute.xlu0 %1270 }
 0xdb8   :  { %1273 = vst.msk [vmem:[#allocation4] sm:$0x3] %vm388_vm2, %v1271_v25 }
 0xdbb   :  { %v1266_v26 = vpop.permute.xlu1 %1265 }
 0xdbc   :  { %1268 = vst.msk [vmem:[#allocation3 + $0x8] sm:$0x3] %vm388_vm2, %v1266_v26 }
 0xdbf   :  { %v1276_v27 = vld [vmem:[#allocation4] sm:$0xff] }
 0xdc0   :  { %1963 = vmatprep.mubr.msk.f32.mxu1 %vm93_vm1, %v1276_v27 }
 0xdc1   :  { %1964 = vmatmul.mubr.msk.f32.vlgmr.msra.gmra.mxu1 %vm93_vm1, %v1277_v28 }
 0xdc2   :  { %1985 = vmatprep.mubr.msk.f32.mxu1 %vm2183_vm0, %v2182_v0 }
 0xdc3   :  { %v1275_v31 = vld [vmem:[#allocation3 + $0x8] sm:$0x3] }
 0xdc4   :  { %1975 = vmatmul.mubr.msk.f32.vlgmr.msra.gmra.mxu0 %vm93_vm1, %v1275_v31 }
 0xdc5   :  { %1996 = vmatprep.mubr.msk.f32.mxu0 %vm2183_vm0, %v2182_v0 }
 0xe81   :  { %v1965_v32 = vpop.f32.mrf.mxu1 }
 0xe83   :  { %v1350_v36 = vpop.f32.mrf.mxu1 }
 0xe84   :  { %v1976_v34 = vpop.f32.mrf.mxu0 }
 0xe85   :  { %v1437_v35 = vadd.f32 %v1976_v34, %v1965_v32 }
 0xe86   :  { %v1431_v37 = vpop.f32.mrf.mxu0 }
 0xe87   :  { %v1445_v38 = vadd.f32 %v1768_v33, %v1437_v35  ;;  %v1432_v40 = vadd.f32 %v1431_v37, %v1350_v36 }
 0xe89   :  { %2094 = vtanh.f32 %v1445_v38  ;;  %v1444_v41 = vadd.f32 %v1768_v33, %v1432_v40  ;;  %v76_v38 = vld [vmem:[#allocation9 + $0x78] sm:$0xff]  ;;  %v75_v40 = vld [vmem:[#allocation9 + $0x70] sm:$0xff] }
 0xe8a   :  { %1978 = vmatpush3.msra.mxu1 %v76_v38 }
 0xe8b   :  { %2096 = vtanh.f32 %v1444_v41  ;;  %v72_v41 = vld [vmem:[#allocation9 + $0x58] sm:$0xff]  ;;  %1979 = vmatprep.subr.mxu1 %v2182_v0 }
 0xe8c   :  { %1989 = vmatpush3.msra.mxu0 %v72_v41  ;;  %1980 = vmatpush3.msra.mxu1 %v75_v40 }
 0xe8d   :  { %1990 = vmatprep.subr.mxu0 %v2182_v0  ;;  %1981 = vmatprep.subr.mxu1 %v2182_v0 }
 0xe96   :  { %v2095_v7 = vpop.eup %2094 }
 0xe97   :  { %v1453_v13 = vmul.f32 %v2095_v7, %v1769_v43 }
 0xe98   :  { %v2097_v15 = vpop.eup %2096 }
 0xe99   :  { %v1457_v17 = vsel %vm1456_vm6, %v1453_v13, 0.0  ;;  %v1452_v46 = vmul.f32 %v2097_v15, %v1769_v43  ;;  %v71_v43 = vld [vmem:[#allocation9 + $0x50] sm:$0xff]  ;;  %v70_v15 = vld [vmem:[#allocation9 + $0x48] sm:$0xff] }
 0xe9a   :  { %1458 = vadd.xlane.f32.xlu1 %v1457_v17  ;;  %1991 = vmatpush3.msra.mxu0 %v71_v43  ;;  %v69_v17 = vld [vmem:[#allocation9 + $0x40] sm:$0xff] }
 0xe9b   :  { %1454 = vadd.xlane.f32.xlu0 %v1452_v46  ;;  %1992 = vmatprep.subr.mxu0 %v2182_v0 }
 0xe9c   :  { %1993 = vmatpush3.msra.mxu0 %v70_v15 }
 0xe9d   :  { %1994 = vmatprep.subr.mxu0 %v2182_v0 }
 0xe9e   :  { %1995 = vmatpush3.msra.mxu0 %v69_v17 }
 0xf23   :  { %v1459_v18 = vpop.xlane.xlu1 %1458 }
 0xf24   :  { %1463 = vst.msk [vmem:[#allocation5 + $0x8] sm:$0x3] %vm1462_vm7, %v1459_v18  ;;  %v1455_v8 = vpop.xlane.xlu0 %1454 }
 0xf25   :  { %1461 = vst.msk [vmem:[#allocation5] sm:$0xff] %vm1460_vm8, %v1455_v8 }
 0xf2b   :  { %v1468_v57 = vld [vmem:[#allocation5 + $0x8] sm:$0x3] }
 0xf2c   :  { %v1464_v48 = vld [vmem:[#allocation5] sm:$0x3]  ;;  %v1465_v49 = vld [vmem:[#allocation5 + $0x2] sm:$0x3]  ;;  %v1466_v11 = vld [vmem:[#allocation5 + $0x4] sm:$0x3] }
 0xf2d   :  { %v1469_v51 = vmax.f32 %v1464_v48, %v1465_v49  ;;  %v1467_v14 = vld [vmem:[#allocation5 + $0x6] sm:$0x3] }
 0xf2f   :  { %v1470_v52 = vmax.f32 %v1469_v51, %v1466_v11 }
 0xf31   :  { %v1471_v54 = vmax.f32 %v1470_v52, %v1467_v14 }
 0xf33   :  { %v1472_v58 = vmax.f32 %v1471_v54, %v1468_v57 }
 0xf35   :  { %v1473_v59 = vsub.f32 %v1464_v48, %v1472_v58  ;;  %v1476_v60 = vsub.f32 %v1465_v49, %v1472_v58  ;;  %v1479_v61 = vsub.f32 %v1466_v11, %v1472_v58  ;;  %v1482_v62 = vsub.f32 %v1467_v14, %v1472_v58 }
 0xf36   :  { %v1485_v3 = vsub.f32 %v1468_v57, %v1472_v58 }
 0xf37   :  { %v1474_v63 = vmul.f32 1.442695, %v1473_v59  ;;  %v1477_v1 = vmul.f32 1.442695, %v1476_v60  ;;  %v1480_v53 = vmul.f32 1.442695, %v1479_v61 }
 0xf38   :  { %v1483_v5 = vmul.f32 1.442695, %v1482_v62  ;;  %v1486_v42 = vmul.f32 1.442695, %v1485_v3  ;;  %v1772_v62 = vld [vmem:[#allocation9 + $0x82] ss:$0 sm:$0xff] }
 0xf39   :  { %2098 = vpow2.f32 %v1474_v63 }
 0xf3a   :  { %2100 = vpow2.f32 %v1477_v1 }
 0xf3b   :  { %2102 = vpow2.f32 %v1480_v53 }
 0xf3c   :  { %2104 = vpow2.f32 %v1483_v5 }
 0xf3d   :  { %2106 = vpow2.f32 %v1486_v42 }
 0xf46   :  { %v2099_v50 = vpop.eup %2098 }
 0xf47   :  { %v2101_v39 = vpop.eup %2100 }
 0xf48   :  { %v1488_v6 = vadd.f32 %v2101_v39, %v2099_v50  ;;  %v2103_v10 = vpop.eup %2102 }
 0xf49   :  { %v2105_v19 = vpop.eup %2104 }
 0xf4a   :  { %v1489_v12 = vadd.f32 %v2103_v10, %v1488_v6  ;;  %v2107_v21 = vpop.eup %2106 }
 0xf4c   :  { %v1490_v20 = vadd.f32 %v2105_v19, %v1489_v12 }
 0xf4e   :  { %v1491_v22 = vadd.f32 %v2107_v21, %v1490_v20 }
 0xf50   :  { %2108 = vrcp.f32 %v1491_v22 }
 0xf5d   :  { %v2109_v23 = vpop.eup %2108 }
 0xf5e   :  { %v1496_v24 = vmul.f32 %v2109_v23, %v2103_v10  ;;  %v1495_v25 = vmul.f32 %v2109_v23, %v2101_v39  ;;  %v1497_v26 = vmul.f32 %v2109_v23, %v2105_v19  ;;  %v1494_v27 = vmul.f32 %v2109_v23, %v2099_v50 }
 0xf5f   :  { %v1498_v28 = vmul.f32 %v2109_v23, %v2107_v21 }
 0xf60   :  { %1527 = vperm.xlu1 %2013, %v1496_v24   ;;  %1508 = vperm.xlu0 %2012, %v1495_v25  }
 0xf64   :  { %1546 = vperm.xlu1 %2013, %v1497_v26  }
 0xf68   :  { %1501 = vperm.xlu1 %2013, %v1494_v27  }
 0xf6c   :  { %1565 = vperm.xlu1 %2013, %v1498_v28  }
 0xfdb   :  { %v1528_v31 = vpop.permute.xlu1 %1527  ;;  %v1509_v32 = vpop.permute.xlu0 %1508 }
 0xfdc   :  { %v1538_v33 = vmul.f32 %v1528_v31, %v2401_v44  ;;  %v1512_v34 = vmul.f32 %v1509_v32, %v2359_v56  ;;  %v1519_v36 = vmul.f32 %v1509_v32, %v2437_v29  ;;  %v1531_v44 = vmul.f32 %v1528_v31, %v2409_v45  ;;  %v74_v56 = vld [vmem:[#allocation9 + $0x68] sm:$0xff] }
 0xfdd   :  { %1982 = vmatpush3.msra.mxu1 %v74_v56 }
 0xfde   :  { %1540 = vrot.lane.b32.xlu0 %v1538_v33, %s2187_s29  ;;  %1514 = vrot.lane.b32.xlu1 %v1512_v34, %s2187_s29 }
 0xfdf   :  { %v1547_v35 = vpop.permute.xlu1 %1546  ;;  %1983 = vmatprep.subr.mxu1 %v2182_v0 }
 0xfe0   :  { %v1557_v37 = vmul.f32 %v1547_v35, %v2351_v55  ;;  %v73_v55 = vld [vmem:[#allocation9 + $0x60] sm:$0xff]  ;;  %v1550_v29 = vmul.f32 %v1547_v35, %v2441_v30 }
 0xfe1   :  { %1984 = vmatpush3.msra.mxu1 %v73_v55 }
 0xfe2   :  { %1559 = vrot.lane.b32.xlu0 %v1557_v37, %s2187_s29  ;;  %1521 = vrot.lane.b32.xlu1 %v1519_v36, %s2187_s29 }
 0xfe3   :  { %v1502_v45 = vpop.permute.xlu1 %1501 }
 0xfe4   :  { %v1505_v47 = vmul.f32 %v1502_v45, %v2462_v9  ;;  %v1504_v30 = vmul.f32 %v1502_v45, %v2301_v4 }
 0xfe6   :  { %1533 = vrot.lane.b32.xlu1 %v1531_v44, %s2187_s29 }
 0xfe7   :  { %v1566_v7 = vpop.permute.xlu1 %1565 }
 0xfe8   :  { %v1570_v11 = vmul.f32 %v1566_v7, %v2297_v2  ;;  %v1568_v59 = vmul.f32 %v1566_v7, %v2468_v16 }
 0xfea   :  { %1552 = vrot.lane.b32.xlu1 %v1550_v29, %s2187_s29 }
0x1050   :  { %v1515_v13 = vpop.permute.xlu1 %1514  ;;  %v1541_v46 = vpop.permute.xlu0 %1540 }
0x1051   :  { %v1517_v52 = vadd.f32 %v1515_v13, %v1504_v30 }
0x1054   :  { %v1522_v18 = vpop.permute.xlu1 %1521  ;;  %v1560_v49 = vpop.permute.xlu0 %1559 }
0x1055   :  { %v1524_v8 = vadd.f32 %v1522_v18, %v1505_v47 }
0x1057   :  { %v1543_v48 = vadd.f32 %v1541_v46, %v1524_v8 }
0x1058   :  { %v1534_v51 = vpop.permute.xlu1 %1533 }
0x1059   :  { %v1562_v14 = vadd.f32 %v1560_v49, %v1543_v48  ;;  %v1536_v54 = vadd.f32 %v1534_v51, %v1517_v52 }
0x105b   :  { %v1571_v57 = vadd.f32 %v1570_v11, %v1562_v14 }
0x105c   :  { %v1553_v58 = vpop.permute.xlu1 %1552 }
0x105d   :  { %v1555_v0 = vadd.f32 %v1553_v58, %v1536_v54  ;;  %1573 = vrot.lane.b32.xlu1 %v1571_v57, %s2185_s28 }
0x105f   :  { %v1569_v9 = vadd.f32 %v1568_v59, %v1555_v0 }
0x1061   :  { %1648 = vrot.lane.b32.xlu0 %v1569_v9, %s2185_s28 }
0x10cf   :  { %v1574_v60 = vpop.permute.xlu1 %1573 }
0x10d0   :  { %1986 = vmatmul.mubr.msk.f32.vlgmr.msra.gmra.mxu1 %vm93_vm1, %v1574_v60 }
0x10d3   :  { %v1649_v4 = vpop.permute.xlu0 %1648 }
0x10d4   :  { %1997 = vmatmul.mubr.msk.f32.vlgmr.msra.gmra.mxu0 %vm93_vm1, %v1649_v4 }
0x1190   :  { %v1643_v2 = vpop.f32.mrf.mxu1 }
0x1192   :  { %v1987_v61 = vpop.f32.mrf.mxu1 }
0x1194   :  { %v1718_v63 = vpop.f32.mrf.mxu0 }
0x1195   :  { %v1719_v1 = vadd.f32 %v1718_v63, %v1643_v2 }
0x1196   :  { %v1998_v16 = vpop.f32.mrf.mxu0 }
0x1197   :  { %v1726_v53 = vadd.f32 %v1772_v62, %v1719_v1 }
0x1199   :  { %1727 = vst.msk [vmem:[#allocation11] sm:$0x3] %vm388_vm2, %v1726_v53 }
0x119a   :  { %2161 = shalt.err (!%p2158_p0)
}
0x119b   :  { %1737 = dma.vmem_to_hbm [thread:$0]  %s1735_s4, 32, %s2510_s3, [#allocation8]  }
0x119c   :  { %2174 = dma.done.wait [#allocation8], 32  }
0x119d   :  { %2175 = vsyncadd [#allocation8], 4294967264 }
0x119e   :  { %1741 = vsyncpa [#allocation7], 1 }
0x119f   :  { %1742 = vsyncpa [#allocation10], 1 }
0x11a0   :  { %1743 = vsyncpa [#allocation8], 1 }

</bundles_post_ra>
